<compile_context>
chip_gen: v5e
topology: v5e:2x2
jax: 0.10.0
libtpu: 0.0.40
codegen_flags: <defaults>
</compile_context>

<pallas_src>
import math

import jax
import jax.numpy as jnp
from jax.experimental import pallas as pl
from jax.experimental.pallas import tpu as pltpu

# --- small config consistent with the module ---
B = 2                        # batch
S = 16                       # seq_length
HIDDEN = 64                  # config.hidden_dim
NUM_HEADS = 4                # config.num_heads
NUM_KV = 2                   # config.num_key_values
HEAD_DIM = HIDDEN // NUM_HEADS          # 16
GROUP = NUM_HEADS // NUM_KV             # GQA repeat factor
Q_DIM = NUM_HEADS * HEAD_DIM            # 64
KV_DIM = NUM_KV * HEAD_DIM              # 32
QKV_DIM = Q_DIM + 2 * KV_DIM            # 128
FUSED_N = 2 * Q_DIM + 3 * KV_DIM        # 224 = [q | q_rot | k | k_rot | v]
ROWS = B * S


def attn_kernel(x_ref, mult_ref, wf_ref, wo_ref, o_ref):
    rows = x_ref.shape[0]
    bb = rows // S
    nkv = bb * NUM_KV

    # --- single fused projection: x @ [w_q*s | w_qr*s | w_k | w_kr | w_v] ---
    x = x_ref[...].astype(jnp.bfloat16)
    proj = jnp.dot(x, wf_ref[...], preferred_element_type=jnp.float32)     # [rows, 224]

    # RoPE (+ identity lanes for V) as one slab-wide f32 multiply, then two
    # narrow adds combine the base/rotated halves. Scale already in weights.
    prod = proj * mult_ref[...]
    q = prod[:, :Q_DIM] + prod[:, Q_DIM:2 * Q_DIM]                         # [rows, 64]
    k = (prod[:, 2 * Q_DIM:2 * Q_DIM + KV_DIM]
         + prod[:, 2 * Q_DIM + KV_DIM:2 * Q_DIM + 2 * KV_DIM])             # [rows, 32]
    v = prod[:, 2 * Q_DIM + 2 * KV_DIM:]                                   # [rows, 32]

    # --- GQA folded into the batch dim of the score matmul ---
    # head index h = kv*GROUP + g (repeat_interleave order), so after the
    # (b, s, h, d) -> (b, h, s, d) transpose a plain reshape yields
    # q: [(b kv), (g s), d] with no extra permutation.
    q3 = (q.reshape(bb, S, NUM_HEADS, HEAD_DIM).transpose(0, 2, 1, 3)
           .reshape(nkv, GROUP * S, HEAD_DIM))
    k3 = (k.reshape(bb, S, NUM_KV, HEAD_DIM).transpose(0, 2, 1, 3)
           .reshape(nkv, S, HEAD_DIM))
    v3 = (v.reshape(bb, S, NUM_KV, HEAD_DIM).transpose(0, 2, 1, 3)
           .reshape(nkv, S, HEAD_DIM))

    # additive causal bias, tiled GROUP x along the (g s) query axis
    r = jax.lax.broadcasted_iota(jnp.int32, (S, S), 0)
    c = jax.lax.broadcasted_iota(jnp.int32, (S, S), 1)
    neg = jnp.where(r >= c, 0.0, -1e30).astype(jnp.float32)                # [S, S]
    bias = jnp.concatenate([neg] * GROUP, axis=0)                          # [G*S, S]

    # batched scores / softmax (f32) / context
    scores = jnp.einsum("hqd,hkd->hqk",
                        q3.astype(jnp.bfloat16), k3.astype(jnp.bfloat16),
                        preferred_element_type=jnp.float32)                # [nkv, G*S, S]
    scores = scores + bias[None]            # finite fill: causal diagonal always unmasked
    m = jnp.max(scores, axis=-1, keepdims=True)
    p = jnp.exp(scores - m)
    denom = jnp.sum(p, axis=-1, keepdims=True)
    probs = p * pl.reciprocal(denom, approx=True)

    # keep probs and V in f32 for the second matmul (accuracy; FLOPs are tiny)
    ctx = jnp.einsum("hqk,hkd->hqd", probs, v3,
                     preferred_element_type=jnp.float32)                   # [nkv, G*S, hd]

    attn = (ctx.reshape(bb, NUM_HEADS, S, HEAD_DIM).transpose(0, 2, 1, 3)
               .reshape(rows, Q_DIM))

    out = jnp.dot(attn.astype(jnp.bfloat16), wo_ref[...],
                  preferred_element_type=jnp.float32)                      # [rows, HIDDEN]
    o_ref[...] = out.astype(o_ref.dtype)


def _rotate_half_matrix(n_heads):
    """Block-diagonal matrix R so that (y @ R) == rotate_half(y) per head."""
    half = HEAD_DIM // 2
    idx = jnp.arange(half)
    blk = jnp.zeros((HEAD_DIM, HEAD_DIM), jnp.float32)
    blk = blk.at[idx + half, idx].set(-1.0)   # out[:half] = -y[half:]
    blk = blk.at[idx, idx + half].set(1.0)    # out[half:] =  y[:half]
    return jnp.kron(jnp.eye(n_heads, dtype=jnp.float32), blk)


def prepare_params(w_qkv, w_out, cos, sin):
    """One-time weight / trig preprocessing. Cache the result; do NOT rebuild
    per forward call."""
    w_q = w_qkv[:, :Q_DIM]
    w_k = w_qkv[:, Q_DIM:Q_DIM + KV_DIM]
    w_v = w_qkv[:, Q_DIM + KV_DIM:]
    scale = 1.0 / math.sqrt(HEAD_DIM)
    w_qr = w_q @ _rotate_half_matrix(NUM_HEADS)
    w_kr = w_k @ _rotate_half_matrix(NUM_KV)
    # 1/sqrt(head_dim) folded into the q weights -> scores arrive pre-scaled.
    w_fused = jnp.concatenate(
        [w_q * scale, w_qr * scale, w_k, w_kr, w_v], axis=1).astype(jnp.bfloat16)

    # merged multiplier slab: [cos_q | sin_q | cos_k | sin_k | ones_v], tiled
    # per head (lanes) and per batch (rows).
    mult = jnp.concatenate(
        [jnp.tile(cos, (1, NUM_HEADS)), jnp.tile(sin, (1, NUM_HEADS)),
         jnp.tile(cos, (1, NUM_KV)), jnp.tile(sin, (1, NUM_KV)),
         jnp.ones((S, KV_DIM), jnp.float32)], axis=-1)                     # [S, 224]
    mult = jnp.tile(mult, (B, 1))                                          # [B*S, 224]
    return w_fused, w_out.astype(jnp.bfloat16), mult


@jax.jit
def causal_self_attention(x, w_fused, w_out_bf, mult):
    x2 = x.reshape(ROWS, HIDDEN)   # free HBM reshape; kernel sees a 2-D slab
    out = pl.pallas_call(
        attn_kernel,
        out_shape=jax.ShapeDtypeStruct((ROWS, HIDDEN), x.dtype),
        grid=(1,),
        in_specs=[
            pl.BlockSpec((ROWS, HIDDEN), lambda i: (0, 0)),
            pl.BlockSpec((ROWS, FUSED_N), lambda i: (0, 0)),
            pl.BlockSpec((HIDDEN, FUSED_N), lambda i: (0, 0)),
            pl.BlockSpec((Q_DIM, HIDDEN), lambda i: (0, 0)),
        ],
        out_specs=pl.BlockSpec((ROWS, HIDDEN), lambda i: (0, 0)),
        compiler_params=pltpu.CompilerParams(dimension_semantics=("arbitrary",)),
    )(x2, mult, w_fused, w_out_bf)
    return out.reshape(B, S, HIDDEN)


# ---------------- pure-JAX reference (mirrors the torch forward, f32) ----------------
def reference(x, w_qkv, w_out, cos, sin):
    qkv = x @ w_qkv
    q, k, v = jnp.split(qkv, [Q_DIM, Q_DIM + KV_DIM], axis=-1)
    q = q.reshape(B, S, NUM_HEADS, HEAD_DIM).transpose(0, 2, 1, 3)
    k = k.reshape(B, S, NUM_KV, HEAD_DIM).transpose(0, 2, 1, 3)
    v = v.reshape(B, S, NUM_KV, HEAD_DIM).transpose(0, 2, 1, 3)

    def rope4(t):
        half = HEAD_DIM // 2
        t1, t2 = t[..., :half], t[..., half:]
        rot = jnp.concatenate([-t2, t1], axis=-1)
        return t * cos[None, None] + rot * sin[None, None]

    q = rope4(q)
    k = rope4(k)
    k = jnp.repeat(k, GROUP, axis=1)
    v = jnp.repeat(v, GROUP, axis=1)
    scores = jnp.einsum("bhqd,bhkd->bhqk", q, k) / math.sqrt(HEAD_DIM)
    mask = jnp.tril(jnp.ones((S, S), dtype=bool))
    scores = jnp.where(mask, scores, -jnp.inf)
    probs = jax.nn.softmax(scores, axis=-1)
    out = jnp.einsum("bhqk,bhkd->bhqd", probs, v)
    out = out.transpose(0, 2, 1, 3).reshape(B, S, Q_DIM)
    return out @ w_out


if __name__ == "__main__":
    key = jax.random.PRNGKey(0)
    kx, kqkv, kout = jax.random.split(key, 3)

    # deterministic xavier-normal-ish weight init (shapes from the module __init__)
    x = jax.random.normal(kx, (B, S, HIDDEN), dtype=jnp.float32)
    w_qkv = jax.random.normal(kqkv, (HIDDEN, QKV_DIM), dtype=jnp.float32) * math.sqrt(
        2.0 / (HIDDEN + QKV_DIM))
    w_out = jax.random.normal(kout, (Q_DIM, HIDDEN), dtype=jnp.float32) * math.sqrt(
        2.0 / (Q_DIM + HIDDEN))

    # RoPE tables (full head_dim, cos/sin duplicated across halves)
    inv_freq = 1.0 / (10000.0 ** (jnp.arange(0, HEAD_DIM // 2, dtype=jnp.float32) /
                                  (HEAD_DIM // 2)))
    t = jnp.arange(S, dtype=jnp.float32)
    freqs = jnp.outer(t, inv_freq)                                    # [S, hd/2]
    cos = jnp.concatenate([jnp.cos(freqs), jnp.cos(freqs)], axis=-1)  # [S, hd]
    sin = jnp.concatenate([jnp.sin(freqs), jnp.sin(freqs)], axis=-1)  # [S, hd]

    # one-time param prep (fused weights, merged trig slab)
    w_fused, w_out_bf, mult = prepare_params(w_qkv, w_out, cos, sin)

    out = causal_self_attention(x, w_fused, w_out_bf, mult)
    out = jax.block_until_ready(out)

    ref = reference(x, w_qkv, w_out, cos, sin)
    assert out.shape == (B, S, HIDDEN)
    # bf16 MXU operands with f32 accumulation -> loosened tolerance
    assert jnp.allclose(out, ref, atol=3e-2, rtol=3e-2), (
        f"max abs err {jnp.max(jnp.abs(out - ref))}")

    print("KERNEL_OK")
</pallas_src>

<mosaic_0001>
module attributes {stable_mosaic.version = 11 : i64} {
  func.func @attn_kernel(%arg0: i32, %arg1: memref<32x64xf32, #tpu.memory_space<vmem>>, %arg2: memref<32x224xf32, #tpu.memory_space<vmem>>, %arg3: memref<64x224xbf16, #tpu.memory_space<vmem>>, %arg4: memref<64x64xbf16, #tpu.memory_space<vmem>>, %arg5: memref<32x64xf32, #tpu.memory_space<vmem>>) attributes {dimension_semantics = [#tpu.dimension_semantics<arbitrary>], iteration_bounds = array<i64: 1>, scalar_prefetch = 0 : i64, scratch_operands = 0 : i64, tpu.core_type = #tpu.core_type<tc>, window_params = [{pipeline_mode = #tpu.pipeline_mode<synchronous>, transform_indices = @transform_0, window_bounds = array<i64: 32, 64>}, {pipeline_mode = #tpu.pipeline_mode<synchronous>, transform_indices = @transform_1, window_bounds = array<i64: 32, 224>}, {pipeline_mode = #tpu.pipeline_mode<synchronous>, transform_indices = @transform_2, window_bounds = array<i64: 64, 224>}, {pipeline_mode = #tpu.pipeline_mode<synchronous>, transform_indices = @transform_3, window_bounds = array<i64: 64, 64>}, {pipeline_mode = #tpu.pipeline_mode<synchronous>, transform_indices = @transform_4, window_bounds = array<i64: 32, 64>}]} {
    %c0 = arith.constant 0 : index
    %c0_0 = arith.constant 0 : index
    %0 = vector.load %arg1[%c0, %c0_0] : memref<32x64xf32, #tpu.memory_space<vmem>>, vector<32x64xf32>
    %1 = arith.truncf %0 : vector<32x64xf32> to vector<32x64xbf16>
    %c0_1 = arith.constant 0 : index
    %c0_2 = arith.constant 0 : index
    %2 = vector.load %arg3[%c0_1, %c0_2] : memref<64x224xbf16, #tpu.memory_space<vmem>>, vector<64x224xbf16>
    %cst = arith.constant dense<0.000000e+00> : vector<32x224xf32>
    %3 = tpu.matmul %1, %2, %cst {dimension_numbers = #tpu.dot_dimension_numbers<[1], [0], [0], [1], [0, 0, 1, 1], [], []>} : vector<32x64xbf16>, vector<64x224xbf16>, vector<32x224xf32> -> vector<32x224xf32>
    %c0_3 = arith.constant 0 : index
    %c0_4 = arith.constant 0 : index
    %4 = vector.load %arg2[%c0_3, %c0_4] : memref<32x224xf32, #tpu.memory_space<vmem>>, vector<32x224xf32>
    %5 = arith.mulf %3, %4 : vector<32x224xf32>
    %6 = vector.extract_strided_slice %5 {offsets = [0, 0], sizes = [32, 64], strides = [1, 1]} : vector<32x224xf32> to vector<32x64xf32>
    %7 = vector.extract_strided_slice %5 {offsets = [0, 64], sizes = [32, 64], strides = [1, 1]} : vector<32x224xf32> to vector<32x64xf32>
    %8 = arith.addf %6, %7 : vector<32x64xf32>
    %9 = vector.extract_strided_slice %5 {offsets = [0, 128], sizes = [32, 32], strides = [1, 1]} : vector<32x224xf32> to vector<32x32xf32>
    %10 = vector.extract_strided_slice %5 {offsets = [0, 160], sizes = [32, 32], strides = [1, 1]} : vector<32x224xf32> to vector<32x32xf32>
    %11 = arith.addf %9, %10 : vector<32x32xf32>
    %12 = vector.extract_strided_slice %5 {offsets = [0, 192], sizes = [32, 32], strides = [1, 1]} : vector<32x224xf32> to vector<32x32xf32>
    %13 = vector.shape_cast %8 : vector<32x64xf32> to vector<2x16x4x16xf32>
    %14 = tpu.transpose %13, [0, 2, 1, 3] : vector<2x16x4x16xf32> -> vector<2x4x16x16xf32>
    %15 = vector.shape_cast %14 : vector<2x4x16x16xf32> to vector<4x32x16xf32>
    %16 = vector.shape_cast %11 : vector<32x32xf32> to vector<2x16x2x16xf32>
    %17 = tpu.transpose %16, [0, 2, 1, 3] : vector<2x16x2x16xf32> -> vector<2x2x16x16xf32>
    %18 = vector.shape_cast %17 : vector<2x2x16x16xf32> to vector<4x16x16xf32>
    %19 = vector.shape_cast %12 : vector<32x32xf32> to vector<2x16x2x16xf32>
    %20 = tpu.transpose %19, [0, 2, 1, 3] : vector<2x16x2x16xf32> -> vector<2x2x16x16xf32>
    %21 = vector.shape_cast %20 : vector<2x2x16x16xf32> to vector<4x16x16xf32>
    %22 = tpu.iota {dimensions = array<i32: 0>} : vector<16x16xi32>
    %23 = tpu.iota {dimensions = array<i32: 1>} : vector<16x16xi32>
    %24 = arith.cmpi sge, %22, %23 : vector<16x16xi32>
    %cst_5 = arith.constant 0.000000e+00 : f32
    %cst_6 = arith.constant -1.000000e+30 : f32
    %25 = vector.broadcast %cst_5 : f32 to vector<16x16xf32>
    %26 = vector.broadcast %cst_6 : f32 to vector<16x16xf32>
    %27 = arith.select %24, %25, %26 : vector<16x16xi1>, vector<16x16xf32>
    %28 = tpu.concatenate %27, %27 in 0 : vector<16x16xf32>, vector<16x16xf32> -> vector<32x16xf32>
    %29 = arith.truncf %15 : vector<4x32x16xf32> to vector<4x32x16xbf16>
    %30 = arith.truncf %18 : vector<4x16x16xf32> to vector<4x16x16xbf16>
    "tpu.trace_start"() <{level = 10 : i32, message = "hqd,hkd->hqk"}> : () -> ()
    %cst_7 = arith.constant dense<0.000000e+00> : vector<4x32x16xf32>
    %31 = tpu.matmul %29, %30, %cst_7 {dimension_numbers = #tpu.dot_dimension_numbers<[2], [2], [1], [1], [0, 0, 0, 1, 1, 1], [0], [0]>} : vector<4x32x16xbf16>, vector<4x16x16xbf16>, vector<4x32x16xf32> -> vector<4x32x16xf32>
    "tpu.trace_stop"() : () -> ()
    %32 = vector.shape_cast %28 : vector<32x16xf32> to vector<1x32x16xf32>
    %33 = vector.broadcast %32 : vector<1x32x16xf32> to vector<4x32x16xf32>
    %34 = arith.addf %31, %33 : vector<4x32x16xf32>
    %cst_8 = arith.constant dense<0xFF800000> : vector<4x32xf32>
    %35 = vector.multi_reduction <maximumf>, %34, %cst_8 [2] : vector<4x32x16xf32> to vector<4x32xf32>
    %36 = vector.shape_cast %35 : vector<4x32xf32> to vector<4x32x1xf32>
    %37 = vector.broadcast %36 : vector<4x32x1xf32> to vector<4x32x16xf32>
    %38 = arith.subf %34, %37 : vector<4x32x16xf32>
    %39 = math.exp %38 : vector<4x32x16xf32>
    %cst_9 = arith.constant dense<0.000000e+00> : vector<4x32xf32>
    %40 = vector.multi_reduction <add>, %39, %cst_9 [2] : vector<4x32x16xf32> to vector<4x32xf32>
    %41 = vector.shape_cast %40 : vector<4x32xf32> to vector<4x32x1xf32>
    %42 = tpu.reciprocal %41 {approx = true} : vector<4x32x1xf32> -> vector<4x32x1xf32>
    %43 = vector.broadcast %42 : vector<4x32x1xf32> to vector<4x32x16xf32>
    %44 = arith.mulf %39, %43 : vector<4x32x16xf32>
    "tpu.trace_start"() <{level = 10 : i32, message = "hqk,hkd->hqd"}> : () -> ()
    %cst_10 = arith.constant dense<0.000000e+00> : vector<4x32x16xf32>
    %45 = tpu.matmul %44, %21, %cst_10 {dimension_numbers = #tpu.dot_dimension_numbers<[2], [1], [1], [2], [0, 0, 0, 1, 1, 2], [0], [0]>} : vector<4x32x16xf32>, vector<4x16x16xf32>, vector<4x32x16xf32> -> vector<4x32x16xf32>
    "tpu.trace_stop"() : () -> ()
    %46 = vector.shape_cast %45 : vector<4x32x16xf32> to vector<2x4x16x16xf32>
    %47 = tpu.transpose %46, [0, 2, 1, 3] : vector<2x4x16x16xf32> -> vector<2x16x4x16xf32>
    %48 = vector.shape_cast %47 : vector<2x16x4x16xf32> to vector<32x64xf32>
    %49 = arith.truncf %48 : vector<32x64xf32> to vector<32x64xbf16>
    %c0_11 = arith.constant 0 : index
    %c0_12 = arith.constant 0 : index
    %50 = vector.load %arg4[%c0_11, %c0_12] : memref<64x64xbf16, #tpu.memory_space<vmem>>, vector<64x64xbf16>
    %cst_13 = arith.constant dense<0.000000e+00> : vector<32x64xf32>
    %51 = tpu.matmul %49, %50, %cst_13 {dimension_numbers = #tpu.dot_dimension_numbers<[1], [0], [0], [1], [0, 0, 1, 1], [], []>} : vector<32x64xbf16>, vector<64x64xbf16>, vector<32x64xf32> -> vector<32x64xf32>
    %c0_14 = arith.constant 0 : index
    %c0_15 = arith.constant 0 : index
    %52 = vector.load %arg5[%c0_14, %c0_15] : memref<32x64xf32, #tpu.memory_space<vmem>>, vector<32x64xf32>
    tpu.vector_store %arg5[%c0_14, %c0_15], %51 {strides = array<i32>} : memref<32x64xf32, #tpu.memory_space<vmem>>, vector<32x64xf32>,
    return
  }
  func.func @transform_0(%arg0: i32) -> (i32, i32) {
    %c0_i32 = arith.constant 0 : i32
    %c0_i32_0 = arith.constant 0 : i32
    %c0_i32_1 = arith.constant 0 : i32
    return %c0_i32, %c0_i32_0 : i32, i32
  }
  func.func @transform_1(%arg0: i32) -> (i32, i32) {
    %c0_i32 = arith.constant 0 : i32
    %c0_i32_0 = arith.constant 0 : i32
    %c0_i32_1 = arith.constant 0 : i32
    return %c0_i32, %c0_i32_0 : i32, i32
  }
  func.func @transform_2(%arg0: i32) -> (i32, i32) {
    %c0_i32 = arith.constant 0 : i32
    %c0_i32_0 = arith.constant 0 : i32
    %c0_i32_1 = arith.constant 0 : i32
    return %c0_i32, %c0_i32_0 : i32, i32
  }
  func.func @transform_3(%arg0: i32) -> (i32, i32) {
    %c0_i32 = arith.constant 0 : i32
    %c0_i32_0 = arith.constant 0 : i32
    %c0_i32_1 = arith.constant 0 : i32
    return %c0_i32, %c0_i32_0 : i32, i32
  }
  func.func @transform_4(%arg0: i32) -> (i32, i32) {
    %c0_i32 = arith.constant 0 : i32
    %c0_i32_0 = arith.constant 0 : i32
    %c0_i32_1 = arith.constant 0 : i32
    return %c0_i32, %c0_i32_0 : i32, i32
  }
}

</mosaic_0001>

<bundles_post_ra>
// kernel: causal_self_attention.1
= control target key start
LH: loop header
LB: loop body
LE: loop exit
PB: predicated region body
PF: predicated region fallthrough
CT: control target
= control target key end

     0   :  { %9 = vsyncpa [#allocation3], 0  ;;  %s4347_s0 = inlined_call_operand.hbm [shape: f32[32,64], index: 0, kind: input, shape index: {}]   ;;  %s4348_s1 = inlined_call_operand.hbm [shape: f32[32,224], index: 1, kind: input, shape index: {}]   ;;  %s4349_s2 = inlined_call_operand.hbm [shape: bf16[64,224], index: 2, kind: input, shape index: {}]   ;;  %s4350_s3 = inlined_call_operand.hbm [shape: bf16[64,64], index: 3, kind: input, shape index: {}]   ;;  %s4351_s4 = inlined_call_operand.hbm [shape: f32[32,64], index: 4, kind: output, shape index: {}]  }
   0x1   :  { %10 = vsyncpa [#allocation6], 0 }
   0x2   :  { %11 = vsyncpa [#allocation9], 0  ;;  %s30_s17 = sshll.u32 %s4348_s1, 4  ;;  %s31_s17 = int_to_ptr.hbm [resolvable:$true] %s30_s17 }
   0x3   :  { %12 = vsyncpa [#allocation4], 0  ;;  %s3023_s18 = smov [#allocation5]   ;;  %s17_s22 = sshll.u32 %s4347_s0, 4  ;;  %s18_s22 = int_to_ptr.hbm [resolvable:$true] %s17_s22 }
   0x4   :  { %s32_s19 = sshll.u32 %s3023_s18, 4  ;;  %s3024_s23 = smov 256   ;;  %s33_s19 = int_to_ptr.vmem [resolvable:$true] %s32_s19 }
   0x5   :  { %s3025_s24 = smov 16   ;;  %s3026_s25 = smov [#allocation2]  }
   0x6   :  { %38 = dma.hbm_to_vmem [thread:$0]  %s31_s17, 1024, %s33_s19, [#allocation6], %s3024_s23, %s3024_s23, %s3025_s24  }
   0x7   :  { %s19_s26 = sshll.u32 %s3026_s25, 4  ;;  %s3027_s27 = smov 128   ;;  %s20_s26 = int_to_ptr.vmem [resolvable:$true] %s19_s26 }
   0x8   :  { %s3028_s28 = smov 8   ;;  %s43_s30 = sshll.u32 %s4349_s2, 4  ;;  %s44_s30 = int_to_ptr.hbm [resolvable:$true] %s43_s30 }
   0x9   :  { %25 = dma.hbm_to_vmem [thread:$0]  %s18_s22, 512, %s20_s26, [#allocation3], %s3027_s27, %s3027_s27, %s3028_s28  }
   0xa   :  { %s3029_s0 = smov [#allocation7]   ;;  %s56_s8 = sshll.u32 %s4350_s3, 4  ;;  %s57_s8 = int_to_ptr.hbm [resolvable:$true] %s56_s8 }
   0xb   :  { %s45_s5 = sshll.u32 %s3029_s0, 4  ;;  %s3030_s9 = smov [#allocation8]   ;;  %s46_s5 = int_to_ptr.vmem [resolvable:$true] %s45_s5 }
   0xc   :  { %51 = dma.hbm_to_vmem [thread:$0]  %s44_s30, 1024, %s46_s5, [#allocation6], %s3027_s27, %s3027_s27, %s3028_s28  }
   0xd   :  { %s58_s10 = sshll.u32 %s3030_s9, 4  ;;  %s3031_s11 = smov 64   ;;  %s59_s10 = int_to_ptr.vmem [resolvable:$true] %s58_s10 }
   0xe   :  { %s3032_s12 = smov 4  }
   0xf   :  { %64 = dma.hbm_to_vmem [thread:$0]  %s57_s8, 512, %s59_s10, [#allocation9], %s3031_s11, %s3031_s11, %s3032_s12  }
  0x10   :  { %3015 = dma.done.wait [#allocation3], 512  }
  0x11   :  { %3016 = vsyncadd [#allocation3], 4294966784 }
  0x12   :  { %3017 = dma.done.wait [#allocation6], 2048  }
  0x13   :  { %3018 = vsyncadd [#allocation6], 4294965248 }
  0x14   :  { %3019 = dma.done.wait [#allocation9], 512  }
  0x15   :  { %3020 = vsyncadd [#allocation9], 4294966784  ;;  %v2644_v0 = vld [vmem:[#allocation7 + $0x30] sm:$0xf]  ;;  %v2703_v1 = vld [vmem:[#allocation7 + $0x34] sm:$0xf0] }
  0x16   :  { %v2636_v2 = vld [vmem:[#allocation7 + $0x20] sm:$0xf]  ;;  %v2645_v3 = vor.u32 %v2703_v1, %v2644_v0  ;;  %v2701_v4 = vld [vmem:[#allocation7 + $0x24] sm:$0xf0]  ;;  %v2628_v6 = vld [vmem:[#allocation7 + $0x10] sm:$0xf] }
  0x17   :  { %v2637_v5 = vor.u32 %v2701_v4, %v2636_v2  ;;  %v2699_v7 = vld [vmem:[#allocation7 + $0x14] sm:$0xf0]  ;;  %v2620_v9 = vld [vmem:[#allocation7] sm:$0xf]  ;;  %v2697_v10 = vld [vmem:[#allocation7 + $0x4] sm:$0xf0] }
  0x18   :  { %147 = vmatpush.bf16.msra.mxu0 %v2645_v3  ;;  %2708 = vmatpush.bf16.msra.mxu1 %v2645_v3  ;;  %v2629_v8 = vor.u32 %v2699_v7, %v2628_v6  ;;  %v2702_v11 = vld [vmem:[#allocation7 + $0x34] sm:$0xf]  ;;  %v2646_v12 = vld [vmem:[#allocation7 + $0x38] sm:$0xf0]  ;;  %v82_v13 = vld [vmem:[#allocation2] sm:$0xff]  ;;  %v2621_v14 = vor.u32 %v2697_v10, %v2620_v9  ;;  %vm136_vm0 = vcmask 523264  }
  0x19   :  { %v83_v15 = vld [vmem:[#allocation2 + $0x8] sm:$0xff]  ;;  %v84_v16 = vld [vmem:[#allocation2 + $0x10] sm:$0xff]  ;;  %v85_v17 = vld [vmem:[#allocation2 + $0x18] sm:$0xff]  ;;  %v2649_v18 = vor.u32 %v2702_v11, %v2646_v12  ;;  %s3033_s2 = smov 96   ;;  %s3034_s3 = smov 112   ;;  %vm278_vm1 = vcmask 1047556  }
  0x1a   :  { %v2700_v19 = vld [vmem:[#allocation7 + $0x24] sm:$0xf]  ;;  %v2638_v20 = vld [vmem:[#allocation7 + $0x28] sm:$0xf0]  ;;  %v86_v21 = vpack.c.bf16 %v83_v15, %v82_v13  ;;  %v87_v22 = vpack.c.bf16 %v85_v17, %v84_v16  ;;  %v2698_v24 = vld [vmem:[#allocation7 + $0x14] sm:$0xf] }
  0x1b   :  { %v2641_v23 = vor.u32 %v2700_v19, %v2638_v20  ;;  %v2630_v25 = vld [vmem:[#allocation7 + $0x18] sm:$0xf0]  ;;  %v2696_v27 = vld [vmem:[#allocation7 + $0x4] sm:$0xf]  ;;  %v2622_v28 = vld [vmem:[#allocation7 + $0x8] sm:$0xf0] }
  0x1c   :  { %148 = vmatpush.bf16.msra.mxu0 %v2637_v5  ;;  %2709 = vmatpush.bf16.msra.mxu1 %v2637_v5  ;;  %v2633_v26 = vor.u32 %v2698_v24, %v2630_v25  ;;  %v2625_v29 = vor.u32 %v2696_v27, %v2622_v28  ;;  %v181_v30 = vld [vmem:[#allocation5] sm:$0xff]  ;;  %v183_v34 = vld [vmem:[#allocation5 + $0x10] sm:$0xff]  ;;  %v182_v39 = vld [vmem:[#allocation5 + $0x8] sm:$0xff]  ;;  %s3035_s13 = smov 80   ;;  %v3036_v12 = vmov 1983009808  }
  0x1d   :  { %v187_v38 = vld [vmem:[#allocation5 + $0x30] sm:$0xff]  ;;  %v184_v43 = vld [vmem:[#allocation5 + $0x18] sm:$0xff]  ;;  %v185_v46 = vld [vmem:[#allocation5 + $0x20] sm:$0xff]  ;;  %v283_v13 = vunpack.c.l.s4 %v3036_v12  ;;  %v3037_v16 = vmov 1934713408   ;;  %vm1534_vm2 = vcmask 130048  }
  0x1e   :  { %v186_v47 = vld [vmem:[#allocation5 + $0x28] sm:$0xff]  ;;  %v188_v51 = vld [vmem:[#allocation5 + $0x38] sm:$0xff]  ;;  %v307_v17 = vunpack.c.l.s4 %v3037_v16  ;;  %s3039_s14 = smov 48   ;;  %s3040_s15 = smov 32   ;;  %vm2524_vm5 = vcmask 261120   ;;  %vm2529_vm6 = vcmask 392192  }
  0x1f   :  { %s3041_s16 = smov [#allocation10]   ;;  %s2603_s20 = sshll.u32 %s4351_s4, 4  ;;  %s2604_s20 = int_to_ptr.hbm [resolvable:$true] %s2603_s20 }
  0x20   :  { %149 = vmatpush.bf16.msra.mxu0 %v2629_v8  ;;  %2710 = vmatpush.bf16.msra.mxu1 %v2629_v8  ;;  %s2601_s17 = sshll.u32 %s3041_s16, 4  ;;  %s2602_s17 = int_to_ptr.vmem [resolvable:$true] %s2601_s17 }
  0x24   :  { %150 = vmatpush.bf16.msra.mxu0 %v2621_v14  ;;  %2711 = vmatpush.bf16.msra.mxu1 %v2621_v14  ;;  %v3118_v14 = vunpack.c.0.s8 %v283_v13 }
  0x27   :  { %2650 = vmatmul.msk.bf16.vlgmr.msra.gmra.mxu0 %vm136_vm0, %v86_v21  ;;  %2651 = vmatmul.msk.bf16.vlgmr.msra.gmra.mxu1 %vm136_vm0, %v87_v22 }
  0x28   :  { %166 = vmatpush.bf16.msrb.mxu1 %v2649_v18 }
  0x2c   :  { %167 = vmatpush.bf16.msrb.mxu1 %v2641_v23 }
  0x30   :  { %168 = vmatpush.bf16.msrb.mxu1 %v2633_v26  ;;  %v3122_v26 = vunpack.c.0.s8 %v307_v17 }
  0x34   :  { %169 = vmatpush.bf16.msrb.mxu1 %v2625_v29 }
  0x37   :  { %2652 = vmatmul.msk.bf16.vlgmr.msrb.gmra.mxu1 %vm136_vm0, %v86_v21 }
  0x47   :  { %2653 = vmatmul.msk.bf16.gmra.mxu1 %vm136_vm0, %v87_v22 }
  0xa4   :  { %v152_v31 = vpop.f32.mrf.mxu0  ;;  %v157_v32 = vpop.f32.mrf.mxu1 }
  0xa5   :  { %v189_v33 = vmul.f32 %v181_v30, %v152_v31  ;;  %v193_v49 = vmul.f32 %v185_v46, %v157_v32 }
  0xa7   :  { %201 = vrot.lane.b32.xlu1 %v189_v33, %s3031_s11 }
  0xac   :  { %v154_v35 = vpop.f32.mrf.mxu0  ;;  %v159_v36 = vpop.f32.mrf.mxu1 }
  0xad   :  { %v191_v37 = vmul.f32 %v183_v34, %v154_v35  ;;  %v195_v41 = vmul.f32 %v187_v38, %v159_v36 }
  0xaf   :  { %203 = vrot.lane.b32.xlu1 %v191_v37, %s3031_s11 }
  0xb4   :  { %v171_v40 = vpop.f32.mrf.mxu1 }
  0xb5   :  { %v190_v42 = vmul.f32 %v182_v39, %v171_v40 }
  0xb7   :  { %221 = vrot.lane.b32.xlu0 %v190_v42, %s3033_s2  ;;  %207 = vrot.lane.b32.xlu1 %v195_v41, %s3031_s11 }
  0xbc   :  { %v173_v44 = vpop.f32.mrf.mxu1 }
  0xbd   :  { %v192_v45 = vmul.f32 %v184_v43, %v173_v44 }
  0xbf   :  { %223 = vrot.lane.b32.xlu0 %v192_v45, %s3033_s2  ;;  %v2771_v10 = vpack.i.bf16 %v190_v42, %v192_v45 }
  0xc4   :  { %v176_v48 = vpop.f32.mrf.mxu1 }
  0xc5   :  { %v194_v50 = vmul.f32 %v186_v47, %v176_v48 }
  0xc7   :  { %205 = vrot.lane.b32.xlu0 %v193_v49, %s3031_s11  ;;  %225 = vrot.lane.b32.xlu2 %v194_v50, %s3033_s2 }
  0xcc   :  { %v178_v52 = vpop.f32.mrf.mxu1 }
  0xcd   :  { %v196_v53 = vmul.f32 %v188_v51, %v178_v52 }
  0xcf   :  { %227 = vrot.lane.b32.xlu2 %v196_v53, %s3033_s2  ;;  %v3114_v11 = vpack.i.bf16 %v194_v50, %v196_v53 }
 0x119   :  { %v202_v54 = vpop.permute.xlu1 %201 }
 0x11a   :  { %v3100_v57 = vadd.f32 %v202_v54, %v189_v33 }
 0x121   :  { %v226_v55 = vpop.permute.xlu2 %225  ;;  %v204_v56 = vpop.permute.xlu1 %203 }
 0x122   :  { %v3102_v58 = vadd.f32 %v204_v56, %v191_v37  ;;  %v235_v63 = vadd.f32 %v226_v55, %v194_v50 }
 0x124   :  { %v2741_v59 = vpack.i.bf16 %v3102_v58, %v3100_v57  ;;  %v838_v19 = vrot.slane %v235_v63, 4 }
 0x126   :  { %2742 = vrot.lane.b32.xlu1 %v2741_v59, %s3033_s2  ;;  %2737 = vrot.lane.b32.xlu0 %v2741_v59, %s3034_s3  ;;  %v839_v30 = vsel %vm278_vm1, 0.0, %v838_v19 }
 0x127   :  { %v3140_v44 = vperm.slane %v839_v30, %v3118_v14 }
 0x129   :  { %v222_v60 = vpop.permute.xlu0 %221  ;;  %v228_v61 = vpop.permute.xlu2 %227 }
 0x12a   :  { %v236_v62 = vadd.f32 %v228_v61, %v196_v53  ;;  %v233_v2 = vadd.f32 %v222_v60, %v190_v42  ;;  %v208_v5 = vpop.permute.xlu1 %207  ;;  %v3136_v42 = vperm.slane %v235_v63, %v3118_v14  ;;  %v336_v60 = vrot.slane %v3102_v58, 4 }
 0x12b   :  { %v3107_v7 = vadd.f32 %v208_v5, %v195_v41  ;;  %v872_v61 = vrot.slane %v3140_v44, 4 }
 0x12c   :  { %v2751_v0 = vpack.i.bf16 %v236_v62, %v235_v63  ;;  %v734_v20 = vrot.slane %v233_v2, 4  ;;  %v890_v25 = vrot.slane %v236_v62, 4  ;;  %v739_v32 = vperm.slane %v233_v2, %v3118_v14 }
 0x12d   :  { %v3143_v46 = vperm.slane %v236_v62, %v3118_v14  ;;  %v860_v56 = vrot.slane %v3136_v42, 4 }
 0x12e   :  { %2752 = vrot.lane.b32.xlu0 %v2751_v0, %s3034_s3  ;;  %v735_v31 = vsel %vm278_vm1, 0.0, %v734_v20  ;;  %v891_v38 = vsel %vm278_vm1, 0.0, %v890_v25 }
 0x12f   :  { %v3146_v48 = vperm.slane %v735_v31, %v3118_v14  ;;  %v912_v62 = vrot.slane %v3143_v46, 4 }
 0x131   :  { %v224_v1 = vpop.permute.xlu0 %223 }
 0x132   :  { %v234_v3 = vadd.f32 %v224_v1, %v192_v45  ;;  %v756_v45 = vrot.slane %v739_v32, 4 }
 0x134   :  { %v2731_v4 = vpack.i.bf16 %v234_v3, %v233_v2  ;;  %v786_v15 = vrot.slane %v234_v3, 4  ;;  %v791_v18 = vperm.slane %v234_v3, %v3118_v14  ;;  %v768_v3 = vrot.slane %v3146_v48, 4 }
 0x136   :  { %2732 = vrot.lane.b32.xlu2 %v2731_v4, %s3034_s3  ;;  %v787_v22 = vsel %vm278_vm1, 0.0, %v786_v15  ;;  %v808_v27 = vrot.slane %v791_v18, 4 }
 0x137   :  { %v795_v33 = vperm.slane %v787_v22, %v3118_v14 }
 0x139   :  { %v206_v6 = vpop.permute.xlu0 %205  ;;  %v820_v47 = vrot.slane %v795_v33, 4 }
 0x13a   :  { %v3109_v8 = vadd.f32 %v206_v6, %v193_v49  ;;  %v3149_v49 = vperm.slane %v891_v38, %v3118_v14  ;;  %v448_v6 = vrot.slane %v3107_v7, 4 }
 0x13c   :  { %v2766_v9 = vpack.i.bf16 %v3107_v7, %v3109_v8  ;;  %v392_v13 = vrot.slane %v3109_v8, 4 }
 0x13e   :  { %2747 = vrot.lane.b32.xlu2 %v2741_v59, %s3035_s13  ;;  %2767 = vrot.lane.b32.xlu0 %v2766_v9, %s3035_s13  ;;  %v280_v59 = vrot.slane %v3100_v57, 4 }
 0x13f   :  { %2757 = vrot.lane.b32.xlu1 %v2766_v9, %s3034_s3 }
 0x146   :  { %2762 = vrot.lane.b32.xlu2 %v2766_v9, %s3033_s2  ;;  %v924_v9 = vrot.slane %v3149_v49, 4 }
 0x147   :  { %2772 = vrot.lane.b32.xlu1 %v2771_v10, %s3034_s3 }
 0x14e   :  { %2782 = vrot.lane.b32.xlu2 %v2771_v10, %s3031_s11 }
 0x14f   :  { %2777 = vrot.lane.b32.xlu1 %v3114_v11, %s3034_s3 }
 0x190   :  { %v2733_v21 = vpop.permute.xlu2 %2732 }
 0x191   :  { %v2735_v23 = vunpack.i.h.bf16 %v2733_v21  ;;  %v2734_v24 = vunpack.i.l.bf16 %v2733_v21 }
 0x193   :  { %v796_v28 = vrot.slane %v2735_v23, 4  ;;  %v801_v29 = vperm.slane %v2735_v23, %v3118_v14  ;;  %v744_v37 = vrot.slane %v2734_v24, 4  ;;  %v749_v41 = vperm.slane %v2734_v24, %v3118_v14 }
 0x195   :  { %v797_v34 = vsel %vm278_vm1, 0.0, %v796_v28  ;;  %v806_v35 = vrot.slane %v801_v29, 4  ;;  %v809_v36 = vsel %vm278_vm1, %v801_v29, %v808_v27  ;;  %v745_v51 = vsel %vm278_vm1, 0.0, %v744_v37 }
 0x196   :  { %v805_v39 = vperm.slane %v797_v34, %v3118_v14  ;;  %v817_v40 = vperm.slane %v809_v36, %v3122_v26  ;;  %v754_v55 = vrot.slane %v749_v41, 4  ;;  %v753_v63 = vperm.slane %v745_v51, %v3118_v14 }
 0x197   :  { %v807_v43 = vsel %vm278_vm1, %v806_v35, %v791_v18  ;;  %v757_v0 = vsel %vm278_vm1, %v749_v41, %v756_v45 }
 0x198   :  { %v818_v50 = vrot.slane %v805_v39, 4  ;;  %v3153_v52 = vperm.slane %v807_v43, %v3122_v26  ;;  %v821_v53 = vsel %vm278_vm1, %v805_v39, %v820_v47  ;;  %v832_v54 = vrot.slane %v817_v40, 4  ;;  %v2748_v1 = vpop.permute.xlu2 %2747  ;;  %v2738_v2 = vpop.permute.xlu0 %2737 }
 0x199   :  { %v829_v5 = vperm.slane %v821_v53, %v3122_v26  ;;  %v755_v12 = vsel %vm278_vm1, %v754_v55, %v739_v32  ;;  %v765_v15 = vperm.slane %v757_v0, %v3122_v26  ;;  %v2750_v16 = vunpack.i.h.bf16 %v2748_v1  ;;  %v2743_v19 = vpop.permute.xlu1 %2742 }
 0x19a   :  { %v819_v4 = vsel %vm278_vm1, %v818_v50, %v795_v33  ;;  %v3170_v10 = vsel %vm278_vm1, %v832_v54, %v3153_v52  ;;  %v2749_v17 = vunpack.i.l.bf16 %v2748_v1  ;;  %v2740_v18 = vunpack.i.h.bf16 %v2738_v2 }
 0x19b   :  { %v3176_v20 = vperm.slane %v819_v4, %v3122_v26  ;;  %v830_v21 = vrot.slane %v3153_v52, 4  ;;  %v833_v22 = vsel %vm278_vm1, 0.0, %v832_v54  ;;  %v766_v23 = vrot.slane %v753_v63, 4 }
 0x19c   :  { %v3180_v24 = vrot.slane %v829_v5, 4  ;;  %v984_v25 = vperm.slane %v3170_v10, %v3118_v14  ;;  %v346_v27 = vrot.slane %v2750_v16, 4  ;;  %v290_v28 = vrot.slane %v2749_v17, 4 }
 0x19d   :  { %v769_v29 = vsel %vm278_vm1, %v753_v63, %v768_v3  ;;  %v348_v30 = vrot.slane %v2740_v18, 4  ;;  %v2739_v31 = vunpack.i.l.bf16 %v2738_v2  ;;  %v2745_v32 = vunpack.i.h.bf16 %v2743_v19 }
 0x19e   :  { %v985_v33 = vrot.slane %v833_v22, 4  ;;  %v761_v34 = vperm.slane %v755_v12, %v3122_v26  ;;  %v347_v35 = vsel %vm278_vm1, %v346_v27, %v2740_v18  ;;  %v2744_v36 = vunpack.i.l.bf16 %v2743_v19 }
 0x19f   :  { %v349_v37 = vsel %vm278_vm1, %v2750_v16, %v348_v30  ;;  %v353_v38 = vperm.slane %v347_v35, %v3118_v14  ;;  %v291_v39 = vsel %vm278_vm1, %v290_v28, %v2739_v31  ;;  %v292_v40 = vrot.slane %v2739_v31, 4 }
 0x1a0   :  { %v777_v41 = vperm.slane %v769_v29, %v3122_v26  ;;  %v357_v43 = vperm.slane %v349_v37, %v3118_v14  ;;  %v334_v45 = vrot.slane %v2745_v32, 4  ;;  %v337_v47 = vsel %vm278_vm1, %v2745_v32, %v336_v60 }
 0x1a1   :  { %v780_v50 = vrot.slane %v765_v15, 4  ;;  %v293_v51 = vsel %vm278_vm1, %v2749_v17, %v292_v40  ;;  %v345_v52 = vperm.slane %v337_v47, %v3118_v14  ;;  %v277_v53 = vrot.slane %v2744_v36, 4 }
 0x1a2   :  { %v358_v54 = vrot.slane %v353_v38, 4  ;;  %v370_v55 = vrot.slane %v357_v43, 4  ;;  %v297_v63 = vperm.slane %v291_v39, %v3118_v14  ;;  %v335_v0 = vsel %vm278_vm1, %v334_v45, %v3102_v58 }
 0x1a3   :  { %v341_v1 = vperm.slane %v335_v0, %v3118_v14  ;;  %v372_v2 = vrot.slane %v345_v52, 4  ;;  %v279_v3 = vsel %vm278_vm1, %v277_v53, %v3100_v57  ;;  %v281_v60 = vsel %vm278_vm1, %v2744_v36, %v280_v59 }
 0x1a4   :  { %v831_v4 = vsel %vm278_vm1, 0.0, %v830_v21  ;;  %v301_v5 = vperm.slane %v293_v51, %v3118_v14  ;;  %v371_v12 = vsel %vm278_vm1, %v370_v55, %v345_v52  ;;  %v285_v15 = vperm.slane %v279_v3, %v3118_v14  ;;  %v2753_v51 = vpop.permute.xlu0 %2752 }
 0x1a5   :  { %v767_v16 = vsel %vm278_vm1, %v766_v23, %v3146_v48  ;;  %v778_v58 = vrot.slane %v761_v34, 4  ;;  %v373_v17 = vsel %vm278_vm1, %v357_v43, %v372_v2  ;;  %v289_v18 = vperm.slane %v281_v60, %v3118_v14 }
 0x1a6   :  { %v781_v57 = vsel %vm278_vm1, 0.0, %v780_v50  ;;  %v359_v59 = vsel %vm278_vm1, %v358_v54, %v341_v1  ;;  %v360_v19 = vrot.slane %v341_v1, 4  ;;  %v377_v21 = vperm.slane %v371_v12, %v3122_v26 }
 0x1a7   :  { %v834_v22 = vrot.slane %v3176_v20, 4  ;;  %v3214_v27 = vrot.slane %v777_v41, 4  ;;  %v302_v28 = vrot.slane %v297_v63, 4  ;;  %v381_v29 = vperm.slane %v373_v17, %v3122_v26 }
 0x1a8   :  { %v3219_v48 = vsel %vm278_vm1, 0.0, %v3180_v24  ;;  %v3222_v23 = vperm.slane %v767_v16, %v3122_v26  ;;  %v314_v30 = vrot.slane %v301_v5, 4  ;;  %v304_v31 = vrot.slane %v285_v15, 4 }
 0x1a9   :  { %v3225_v32 = vsel %vm278_vm1, %v780_v50, %v761_v34  ;;  %v947_v35 = vrot.slane %v781_v57, 4  ;;  %v365_v36 = vperm.slane %v359_v59, %v3122_v26  ;;  %v316_v37 = vrot.slane %v289_v18, 4 }
 0x1aa   :  { %v3229_v39 = vsel %vm278_vm1, %v985_v33, %v831_v4  ;;  %v779_v40 = vsel %vm278_vm1, 0.0, %v778_v58  ;;  %v361_v41 = vsel %vm278_vm1, %v353_v38, %v360_v19  ;;  %v386_v43 = vrot.slane %v377_v21, 4 }
 0x1ab   :  { %v996_v45 = vrot.slane %v3219_v48, 4  ;;  %v3236_v47 = vsel %vm278_vm1, 0.0, %v3214_v27  ;;  %v388_v34 = vrot.slane %v381_v29, 4  ;;  %v303_v50 = vsel %vm278_vm1, %v302_v28, %v285_v15 }
 0x1ac   :  { %v782_v52 = vrot.slane %v3222_v23, 4  ;;  %v946_v33 = vperm.slane %v3225_v32, %v3118_v14  ;;  %v305_v53 = vsel %vm278_vm1, %v297_v63, %v304_v31  ;;  %v315_v38 = vsel %vm278_vm1, %v314_v30, %v289_v18 }
 0x1ad   :  { %v3245_v54 = vsel %vm278_vm1, %v947_v35, %v779_v40  ;;  %v369_v55 = vperm.slane %v361_v41, %v3122_v26  ;;  %v382_v0 = vrot.slane %v365_v36, 4  ;;  %v317_v1 = vsel %vm278_vm1, %v301_v5, %v316_v37 }
 0x1ae   :  { %v958_v2 = vrot.slane %v3236_v47, 4  ;;  %v387_v3 = vsel %vm278_vm1, 0.0, %v386_v43  ;;  %v3252_v60 = vperm.slane %v303_v50, %v3122_v26  ;;  %v2755_v4 = vunpack.i.h.bf16 %v2753_v51 }
 0x1af   :  { %v567_v63 = vsel %vm278_vm1, %v388_v34, %v377_v21  ;;  %v313_v12 = vperm.slane %v305_v53, %v3122_v26  ;;  %v321_v15 = vperm.slane %v315_v38, %v3122_v26  ;;  %v2754_v16 = vunpack.i.l.bf16 %v2753_v51  ;;  %v3277_v53 = vpop.permute.xlu2 %2762 }
 0x1b0   :  { %v389_v58 = vsel %vm278_vm1, 0.0, %v388_v34  ;;  %v325_v17 = vperm.slane %v317_v1, %v3122_v26  ;;  %v900_v5 = vrot.slane %v2755_v4, 4  ;;  %v905_v18 = vperm.slane %v2755_v4, %v3118_v14 }
 0x1b1   :  { %v3261_v57 = vsel %vm278_vm1, 0.0, %v382_v0  ;;  %v384_v59 = vrot.slane %v369_v55, 4  ;;  %v848_v19 = vrot.slane %v2754_v16, 4  ;;  %v853_v28 = vperm.slane %v2754_v16, %v3118_v14  ;;  %v2758_v47 = vpop.permute.xlu1 %2757 }
 0x1b2   :  { %v3265_v21 = vperm.slane %v567_v63, %v3118_v14  ;;  %v901_v29 = vsel %vm278_vm1, 0.0, %v900_v5  ;;  %v910_v30 = vrot.slane %v905_v18, 4  ;;  %v913_v31 = vsel %vm278_vm1, %v905_v18, %v912_v62 }
 0x1b3   :  { %v572_v35 = vrot.slane %v389_v58, 4  ;;  %v909_v37 = vperm.slane %v901_v29, %v3118_v14  ;;  %v921_v40 = vperm.slane %v913_v31, %v3122_v26  ;;  %v849_v41 = vsel %vm278_vm1, 0.0, %v848_v19 }
 0x1b4   :  { %v332_v43 = vrot.slane %v325_v17, 4  ;;  %v911_v34 = vsel %vm278_vm1, %v910_v30, %v3143_v46  ;;  %v857_v50 = vperm.slane %v849_v41, %v3118_v14  ;;  %v858_v51 = vrot.slane %v853_v28, 4 }
 0x1b5   :  { %v917_v38 = vperm.slane %v911_v34, %v3122_v26  ;;  %v922_v55 = vrot.slane %v909_v37, 4  ;;  %v925_v62 = vsel %vm278_vm1, %v909_v37, %v924_v9  ;;  %v936_v0 = vrot.slane %v921_v40, 4 }
 0x1b6   :  { %v3284_v1 = vsel %vm278_vm1, 0.0, %v384_v59  ;;  %v3287_v4 = vsel %vm278_vm1, %v384_v59, %v365_v36  ;;  %v326_v46 = vrot.slane %v3252_v60, 4  ;;  %v870_v63 = vrot.slane %v857_v50, 4 }
 0x1b7   :  { %v328_v16 = vrot.slane %v313_v12, 4  ;;  %v933_v58 = vperm.slane %v925_v62, %v3122_v26  ;;  %v861_v17 = vsel %vm278_vm1, %v853_v28, %v860_v56  ;;  %v2765_v5 = vunpack.i.h.bf16 %v3277_v53 }
 0x1b8   :  { %v923_v9 = vsel %vm278_vm1, %v922_v55, %v3149_v49  ;;  %v934_v18 = vrot.slane %v917_v38, 4  ;;  %v937_v19 = vsel %vm278_vm1, 0.0, %v936_v0  ;;  %v859_v36 = vsel %vm278_vm1, %v858_v51, %v3136_v42 }
 0x1b9   :  { %v561_v59 = vrot.slane %v3284_v1, 4  ;;  %v3302_v12 = vsel %vm278_vm1, %v572_v35, %v387_v3  ;;  %v330_v29 = vrot.slane %v321_v15, 4  ;;  %v333_v30 = vsel %vm278_vm1, 0.0, %v332_v43 }
 0x1ba   :  { %v3306_v56 = vsel %vm278_vm1, 0.0, %v326_v46  ;;  %v869_v28 = vperm.slane %v861_v17, %v3122_v26  ;;  %v871_v49 = vsel %vm278_vm1, %v870_v63, %v3140_v44  ;;  %v873_v42 = vsel %vm278_vm1, %v857_v50, %v872_v61 }
 0x1bb   :  { %v3315_v31 = vperm.slane %v923_v9, %v3122_v26  ;;  %v1061_v3 = vrot.slane %v937_v19, 4  ;;  %v865_v35 = vperm.slane %v859_v36, %v3122_v26  ;;  %v446_v37 = vrot.slane %v2765_v5, 4 }
 0x1bc   :  { %v3319_v40 = vsel %vm278_vm1, 0.0, %v328_v16  ;;  %v518_v41 = vrot.slane %v333_v30, 4  ;;  %v935_v34 = vsel %vm278_vm1, 0.0, %v934_v18  ;;  %v3322_v51 = vrot.slane %v933_v58, 4 }
 0x1bd   :  { %v331_v55 = vsel %vm278_vm1, 0.0, %v330_v29  ;;  %v513_v44 = vsel %vm278_vm1, %v332_v43, %v321_v15  ;;  %v3327_v61 = vperm.slane %v871_v49, %v3122_v26  ;;  %v881_v50 = vperm.slane %v873_v42, %v3122_v26 }
 0x1be   :  { %v3332_v62 = vsel %vm278_vm1, %v328_v16, %v3252_v60  ;;  %v3335_v46 = vsel %vm278_vm1, %v936_v0, %v917_v38  ;;  %v884_v63 = vrot.slane %v869_v28, 4  ;;  %v2764_v58 = vunpack.i.l.bf16 %v3277_v53 }
 0x1bf   :  { %v938_v17 = vrot.slane %v3315_v31, 4  ;;  %v3340_v9 = vsel %vm278_vm1, %v1061_v3, %v935_v34  ;;  %v882_v15 = vrot.slane %v865_v35, 4  ;;  %v447_v43 = vsel %vm278_vm1, %v446_v37, %v3107_v7 }
 0x1c0   :  { %v507_v18 = vrot.slane %v3319_v40, 4  ;;  %v3346_v60 = vperm.slane %v513_v44, %v3118_v14  ;;  %v3349_v38 = vsel %vm278_vm1, %v518_v41, %v331_v55  ;;  %v3353_v53 = vsel %vm278_vm1, 0.0, %v3322_v51 }
 0x1c1   :  { %v886_v16 = vrot.slane %v3327_v61, 4  ;;  %v3358_v19 = vrot.slane %v881_v50, 4  ;;  %v449_v36 = vsel %vm278_vm1, %v2765_v5, %v448_v6  ;;  %v3366_v30 = vsel %vm278_vm1, %v884_v63, %v865_v35 }
 0x1c2   :  { %v3369_v28 = vperm.slane %v447_v43, %v3118_v14  ;;  %v390_v49 = vrot.slane %v2764_v58, 4  ;;  %v3372_v42 = vsel %vm278_vm1, 0.0, %v938_v17  ;;  %v1072_v3 = vrot.slane %v3353_v53, 4 }
 0x1c3   :  { %v3376_v37 = vsel %vm278_vm1, 0.0, %v882_v15  ;;  %v3379_v7 = vsel %vm278_vm1, 0.0, %v884_v63  ;;  %v393_v6 = vsel %vm278_vm1, %v2764_v58, %v392_v13  ;;  %v3385_v5 = vperm.slane %v449_v36, %v3118_v14 }
 0x1c4   :  { %v783_v35 = vsel %vm278_vm1, 0.0, %v782_v52  ;;  %v952_v41 = vperm.slane %v3245_v54, %v3118_v14  ;;  %v3393_v34 = vsel %vm278_vm1, 0.0, %v886_v16  ;;  %v3397_v55 = vsel %vm278_vm1, 0.0, %v3358_v19 }
 0x1c5   :  { %v1022_v13 = vperm.slane %v3366_v30, %v3118_v14  ;;  %v835_v44 = vsel %vm278_vm1, 0.0, %v834_v22  ;;  %v1023_v50 = vrot.slane %v3379_v7, 4  ;;  %v472_v52 = vrot.slane %v3369_v28, 4 }
 0x1c6   :  { %v391_v54 = vsel %vm278_vm1, %v390_v49, %v3109_v8  ;;  %v953_v63 = vsel %vm278_vm1, %v3214_v27, %v3222_v23  ;;  %v3412_v58 = vperm.slane %v393_v6, %v3118_v14  ;;  %v959_v17 = vsel %vm278_vm1, %v958_v2, %v783_v35  ;;  %v2768_v23 = vpop.permute.xlu0 %2767 }
 0x1c7   :  { %v964_v15 = vrot.slane %v952_v41, 4  ;;  %v990_v22 = vperm.slane %v3229_v39, %v3118_v14  ;;  %v484_v43 = vrot.slane %v3385_v5, 4  ;;  %v963_v16 = vperm.slane %v959_v17, %v3118_v14 }
 0x1c8   :  { %v991_v8 = vsel %vm278_vm1, %v3180_v24, %v3176_v20  ;;  %v997_v27 = vsel %vm278_vm1, %v996_v45, %v835_v44  ;;  %v397_v2 = vperm.slane %v391_v54, %v3118_v14  ;;  %v957_v36 = vperm.slane %v953_v63, %v3118_v14 }
 0x1c9   :  { %v965_v39 = vsel %vm278_vm1, %v964_v15, %v946_v33  ;;  %v1001_v49 = vperm.slane %v997_v27, %v3118_v14  ;;  %v970_v20 = vrot.slane %v963_v16, 4  ;;  %v995_v24 = vperm.slane %v991_v8, %v3118_v14 }
 0x1ca   :  { %v3435_v6 = vperm.slane %v965_v39, %v3122_v26  ;;  %v1002_v48 = vrot.slane %v990_v22, 4  ;;  %v2770_v35 = vunpack.i.h.bf16 %v2768_v23  ;;  %v2769_v41 = vunpack.i.l.bf16 %v2768_v23 }
 0x1cb   :  { %v1008_v45 = vrot.slane %v1001_v49, 4  ;;  %v2760_v44 = vunpack.i.h.bf16 %v2758_v47  ;;  %v971_v54 = vsel %vm278_vm1, %v970_v20, %v957_v36  ;;  %v2759_v33 = vunpack.i.l.bf16 %v2758_v47 }
 0x1cc   :  { %v978_v63 = vrot.slane %v3435_v6, 4  ;;  %v1003_v32 = vsel %vm278_vm1, %v1002_v48, %v984_v25  ;;  %v3445_v17 = vperm.slane %v971_v54, %v3122_v26  ;;  %v458_v16 = vrot.slane %v2770_v35, 4 }
 0x1cd   :  { %v3448_v15 = vperm.slane %v1003_v32, %v3122_v26  ;;  %v1009_v22 = vsel %vm278_vm1, %v1008_v45, %v995_v24  ;;  %v402_v27 = vrot.slane %v2769_v41, 4  ;;  %v460_v23 = vrot.slane %v2760_v44, 4 }
 0x1ce   :  { %v3452_v8 = vperm.slane %v1009_v22, %v3122_v26  ;;  %v404_v36 = vrot.slane %v2759_v33, 4  ;;  %v416_v39 = vrot.slane %v397_v2, 4  ;;  %v979_v10 = vsel %vm278_vm1, %v3445_v17, %v978_v63 }
 0x1cf   :  { %v1016_v25 = vrot.slane %v3448_v15, 4  ;;  %v459_v47 = vsel %vm278_vm1, %v458_v16, %v2760_v44  ;;  %v1513_v49 = vpack.c.bf16 %v979_v10, %v979_v10  ;;  %v461_v20 = vsel %vm278_vm1, %v2770_v35, %v460_v23 }
 0x1d0   :  { %v465_v24 = vperm.slane %v459_v47, %v3118_v14  ;;  %v403_v48 = vsel %vm278_vm1, %v402_v27, %v2759_v33  ;;  %v469_v54 = vperm.slane %v461_v20, %v3118_v14  ;;  %v405_v32 = vsel %vm278_vm1, %v2769_v41, %v404_v36 }
 0x1d1   :  { %v1017_v45 = vsel %vm278_vm1, %v3452_v8, %v1016_v25  ;;  %v409_v63 = vperm.slane %v403_v48, %v3118_v14  ;;  %v1575_v0 = vunpack.c.l.b16 %v1513_v49  ;;  %v1034_v48 = vrot.slane %v3397_v55, 4 }
 0x1d2   :  { %v1514_v22 = vpack.c.bf16 %v1017_v45, %v1017_v45  ;;  %v470_v29 = vrot.slane %v465_v24, 4  ;;  %v473_v44 = vsel %vm278_vm1, %v465_v24, %v472_v52  ;;  %v482_v16 = vrot.slane %v469_v54, 4 }
 0x1d3   :  { %v481_v35 = vperm.slane %v473_v44, %v3122_v26  ;;  %v485_v33 = vsel %vm278_vm1, %v469_v54, %v484_v43  ;;  %v414_v41 = vrot.slane %v409_v63, 4  ;;  %v413_v52 = vperm.slane %v405_v32, %v3118_v14 }
 0x1d4   :  { %v1576_v27 = vunpack.c.l.b16 %v1514_v22  ;;  %v471_v23 = vsel %vm278_vm1, %v470_v29, %v3369_v28  ;;  %v493_v10 = vperm.slane %v485_v33, %v3122_v26  ;;  %v483_v25 = vsel %vm278_vm1, %v482_v16, %v3385_v5 }
 0x1d5   :  { %v477_v36 = vperm.slane %v471_v23, %v3122_v26  ;;  %v496_v47 = vrot.slane %v481_v35, 4  ;;  %v489_v20 = vperm.slane %v483_v25, %v3122_v26  ;;  %v415_v43 = vsel %vm278_vm1, %v414_v41, %v397_v2 }
 0x1d6   :  { %v1577_v49 = vpack.c.b16 %v1576_v27, %v1575_v0  ;;  %v500_v24 = vrot.slane %v493_v10, 4  ;;  %v417_v45 = vsel %vm278_vm1, %v409_v63, %v416_v39  ;;  %v976_v32 = vrot.slane %v3445_v17, 4 }
 0x1d7   :  { %v494_v29 = vrot.slane %v477_v36, 4  ;;  %v497_v28 = vsel %vm278_vm1, 0.0, %v496_v47  ;;  %v498_v22 = vrot.slane %v489_v20, 4  ;;  %v3488_v0 = vsel %vm278_vm1, %v1023_v50, %v3376_v37 }
 0x1d8   :  { %v1585_v54 = vsel %vm1534_vm2, %v1577_v49, 0  ;;  %v501_v5 = vsel %vm278_vm1, 0.0, %v500_v24  ;;  %v428_v2 = vrot.slane %v3412_v58, 4  ;;  %v664_v44 = vsel %vm278_vm1, %v496_v47, %v477_v36 }
 0x1d9   :  { %1594 = vmatpush.bf16.xpose.msra.mxu3 %v1585_v54  ;;  %v421_v39 = vperm.slane %v415_v43, %v3122_v26  ;;  %v495_v63 = vsel %vm278_vm1, 0.0, %v494_v29  ;;  %v669_v35 = vrot.slane %v497_v28, 4  ;;  %v425_v16 = vperm.slane %v417_v45, %v3122_v26 }
 0x1da   :  { %v426_v33 = vrot.slane %v413_v52, 4  ;;  %v499_v17 = vsel %vm278_vm1, 0.0, %v498_v22  ;;  %v675_v7 = vsel %vm278_vm1, %v500_v24, %v489_v20  ;;  %v680_v27 = vrot.slane %v501_v5, 4 }
 0x1db   :  { %v429_v37 = vsel %vm278_vm1, %v413_v52, %v428_v2  ;;  %v440_v10 = vrot.slane %v425_v16, 4  ;;  %v977_v41 = vsel %vm278_vm1, %v976_v32, %v3435_v6  ;;  %v438_v25 = vrot.slane %v421_v39, 4 }
 0x1dc   :  { %v427_v50 = vsel %vm278_vm1, %v426_v33, %v3412_v58  ;;  %v437_v23 = vperm.slane %v429_v37, %v3122_v26  ;;  %v1014_v47 = vrot.slane %v3452_v8, 4  ;;  %v1511_v49 = vpack.c.bf16 %v977_v41, %v977_v41 }
 0x1dd   :  { %v433_v36 = vperm.slane %v427_v50, %v3122_v26  ;;  %v1028_v20 = vperm.slane %v3488_v0, %v3118_v14  ;;  %v441_v52 = vsel %vm278_vm1, 0.0, %v440_v10  ;;  %v610_v24 = vsel %vm278_vm1, %v440_v10, %v421_v39 }
 0x1de   :  { %v506_v58 = vperm.slane %v3332_v62, %v3118_v14  ;;  %v3512_v43 = vperm.slane %v664_v44, %v3118_v14  ;;  %v3515_v6 = vperm.slane %v675_v7, %v3118_v14  ;;  %v444_v29 = vrot.slane %v437_v23, 4 }
 0x1df   :  { %v1015_v8 = vsel %vm278_vm1, %v1014_v47, %v3448_v15  ;;  %v3520_v28 = vsel %vm278_vm1, %v669_v35, %v495_v63  ;;  %v3523_v45 = vsel %vm278_vm1, %v680_v27, %v499_v17  ;;  %v1531_v22 = vunpack.c.l.b16 %v1511_v49 }
 0x1e0   :  { %v1512_v54 = vpack.c.bf16 %v1015_v8, %v1015_v8  ;;  %v439_v62 = vsel %vm278_vm1, 0.0, %v438_v25  ;;  %v442_v5 = vrot.slane %v433_v36, 4  ;;  %v3527_v32 = vperm.slane %v610_v24, %v3118_v14 }
 0x1e1   :  { %v615_v2 = vrot.slane %v441_v52, 4  ;;  %v508_v15 = vsel %vm278_vm1, %v507_v18, %v3306_v56  ;;  %v523_v39 = vperm.slane %v3349_v38, %v3118_v14  ;;  %v526_v63 = vrot.slane %v506_v58, 4 }
 0x1e2   :  { %v1532_v44 = vunpack.c.l.b16 %v1512_v54  ;;  %v3536_v35 = vsel %vm278_vm1, 0.0, %v444_v29  ;;  %v512_v16 = vperm.slane %v508_v15, %v3118_v14  ;;  %v538_v33 = vrot.slane %v3346_v60, 4 }
 0x1e3   :  { %v560_v17 = vperm.slane %v3287_v4, %v3118_v14  ;;  %v562_v56 = vsel %vm278_vm1, %v561_v59, %v3261_v57  ;;  %v577_v40 = vperm.slane %v3302_v12, %v3118_v14  ;;  %v592_v18 = vrot.slane %v3265_v21, 4 }
 0x1e4   :  { %v1533_v7 = vpack.c.b16 %v1532_v44, %v1531_v22  ;;  %v527_v38 = vsel %vm278_vm1, %v512_v16, %v526_v63  ;;  %v539_v27 = vsel %vm278_vm1, %v523_v39, %v538_v33  ;;  %v566_v37 = vperm.slane %v562_v56, %v3118_v14 }
 0x1e5   :  { %v580_v50 = vrot.slane %v560_v17, 4  ;;  %v3554_v23 = vperm.slane %v527_v38, %v3122_v26  ;;  %v3557_v1 = vperm.slane %v539_v27, %v3122_v26  ;;  %v593_v57 = vsel %vm278_vm1, %v577_v40, %v592_v18 }
 0x1e6   :  { %v1542_v4 = vsel %vm1534_vm2, %v1533_v7, 0  ;;  %v3561_v59 = vsel %vm278_vm1, 0.0, %v442_v5  ;;  %v3564_v12 = vsel %vm278_vm1, %v444_v29, %v433_v36  ;;  %v3568_v41 = vperm.slane %v593_v57, %v3122_v26 }
 0x1e7   :  { %1551 = vmatpush.bf16.xpose.msra.mxu2 %v1542_v4  ;;  %v581_v10 = vsel %vm278_vm1, %v566_v37, %v580_v50  ;;  %v552_v25 = vrot.slane %v3557_v1, 4  ;;  %v524_v49 = vrot.slane %v512_v16, 4  ;;  %v536_v52 = vrot.slane %v523_v39, 4 }
 0x1e8   :  { %v3572_v47 = vperm.slane %v581_v10, %v3122_v26  ;;  %v3575_v24 = vsel %vm278_vm1, %v615_v2, %v439_v62  ;;  %v606_v8 = vrot.slane %v3568_v41, 4  ;;  %v578_v36 = vrot.slane %v566_v37, 4 }
 0x1e9   :  { %v590_v29 = vrot.slane %v577_v40, 4  ;;  %v553_v54 = vsel %vm278_vm1, %v552_v25, %v3554_v23  ;;  %v525_v22 = vsel %vm278_vm1, %v524_v49, %v506_v58  ;;  %v537_v5 = vsel %vm278_vm1, %v536_v52, %v3346_v60 }
 0x1ea   :  { %v1029_v44 = vsel %vm278_vm1, %v3358_v19, %v3327_v61  ;;  %v607_v62 = vsel %vm278_vm1, %v606_v8, %v3572_v47  ;;  %v1499_v2 = vpack.c.bf16 %v553_v54, %v553_v54  ;;  %v3589_v15 = vperm.slane %v525_v22, %v3122_v26 }
 0x1eb   :  { %v543_v39 = vperm.slane %v537_v5, %v3122_v26  ;;  %v1500_v63 = vpack.c.bf16 %v607_v62, %v607_v62  ;;  %v579_v16 = vsel %vm278_vm1, %v578_v36, %v560_v17  ;;  %v591_v58 = vsel %vm278_vm1, %v590_v29, %v3265_v21 }
 0x1ec   :  { %v1035_v61 = vsel %vm278_vm1, %v1034_v48, %v3393_v34  ;;  %v1567_v60 = vunpack.c.l.b16 %v1499_v2  ;;  %v3600_v33 = vperm.slane %v579_v16, %v3122_v26  ;;  %v597_v7 = vperm.slane %v591_v58, %v3122_v26 }
 0x1ed   :  { %v548_v19 = vrot.slane %v543_v39, 4  ;;  %v1568_v56 = vunpack.c.l.b16 %v1500_v63  ;;  %v1033_v40 = vperm.slane %v1029_v44, %v3118_v14  ;;  %v1039_v17 = vperm.slane %v1035_v61, %v3118_v14 }
 0x1ee   :  { %v1040_v21 = vrot.slane %v1028_v20, 4  ;;  %v602_v34 = vrot.slane %v597_v7, 4  ;;  %v1067_v48 = vsel %vm278_vm1, %v3322_v51, %v3315_v31  ;;  %v1073_v18 = vsel %vm278_vm1, %v1072_v3, %v3372_v42 }
 0x1ef   :  { %v549_v55 = vsel %vm278_vm1, %v548_v19, %v3589_v15  ;;  %v1571_v38 = vpack.c.b16 %v1568_v56, %v1567_v60  ;;  %v1046_v20 = vrot.slane %v1039_v17, 4  ;;  %v1077_v31 = vperm.slane %v1073_v18, %v3118_v14 }
 0x1f0   :  { %v1495_v27 = vpack.c.bf16 %v549_v55, %v549_v55  ;;  %v1041_v0 = vsel %vm278_vm1, %v1040_v21, %v1022_v13  ;;  %v603_v37 = vsel %vm278_vm1, %v602_v34, %v3600_v33  ;;  %v4352_v51 = vperm.slane %v3340_v9, %v3118_v14 }
 0x1f1   :  { %v1045_v50 = vperm.slane %v1041_v0, %v3122_v26  ;;  %2656 = vmatmul.msk.bf16.vlgmr.msra.gmra.mxu3 %vm1534_vm2, %v1571_v38  ;;  %v1496_v42 = vpack.c.bf16 %v603_v37, %v603_v37  ;;  %v1047_v30 = vsel %vm278_vm1, %v1046_v20, %v1033_v40  ;;  %v1071_v13 = vperm.slane %v1067_v48, %v3118_v14 }
 0x1f2   :  { %v1078_v53 = vrot.slane %v4352_v51, 4  ;;  %v1523_v3 = vunpack.c.l.b16 %v1495_v27  ;;  %v1051_v4 = vperm.slane %v1047_v30, %v3122_v26  ;;  %v4353_v10 = vperm.slane %v3335_v46, %v3118_v14 }
 0x1f3   :  { %v1054_v57 = vrot.slane %v1045_v50, 4  ;;  %v1084_v49 = vrot.slane %v1077_v31, 4  ;;  %v626_v9 = vrot.slane %v3536_v35, 4  ;;  %v1524_v52 = vunpack.c.l.b16 %v1496_v42 }
 0x1f4   :  { %v1079_v25 = vsel %vm278_vm1, %v1078_v53, %v4353_v10  ;;  %v554_v36 = vrot.slane %v3554_v23, 4  ;;  %v1052_v22 = vrot.slane %v1051_v4, 4  ;;  %v608_v5 = vrot.slane %v3572_v47, 4 }
 0x1f5   :  { %v1083_v8 = vperm.slane %v1079_v25, %v3122_v26  ;;  %v1055_v29 = vsel %vm278_vm1, %v1051_v4, %v1054_v57  ;;  %v1085_v54 = vsel %vm278_vm1, %v1084_v49, %v1071_v13  ;;  %v1527_v44 = vpack.c.b16 %v1524_v52, %v1523_v3 }
 0x1f6   :  { %v1089_v46 = vperm.slane %v1085_v54, %v3122_v26  ;;  %v1517_v2 = vpack.c.bf16 %v1055_v29, %v1055_v29  ;;  %v1053_v63 = vsel %vm278_vm1, %v1052_v22, %v1045_v50  ;;  %v555_v35 = vsel %vm278_vm1, %v3557_v1, %v554_v36 }
 0x1f7   :  { %v1092_v62 = vrot.slane %v1083_v8, 4  ;;  %v609_v23 = vsel %vm278_vm1, %v3568_v41, %v608_v5  ;;  %v550_v16 = vrot.slane %v3589_v15, 4  ;;  %v627_v58 = vsel %vm278_vm1, %v626_v9, %v3561_v59  ;;  %2654 = vmatmul.msk.bf16.vlgmr.msra.gmra.mxu2 %vm1534_vm2, %v1527_v44 }
 0x1f8   :  { %v1090_v61 = vrot.slane %v1089_v46, 4  ;;  %v1515_v60 = vpack.c.bf16 %v1053_v63, %v1053_v63  ;;  %v1661_v56 = vunpack.c.l.b16 %v1517_v2  ;;  %v1501_v40 = vpack.c.bf16 %v555_v35, %v555_v35 }
 0x1f9   :  { %v1093_v47 = vsel %vm278_vm1, %v1089_v46, %v1092_v62  ;;  %v1502_v17 = vpack.c.bf16 %v609_v23, %v609_v23  ;;  %v625_v1 = vperm.slane %v3564_v12, %v3118_v14  ;;  %v551_v15 = vsel %vm278_vm1, %v543_v39, %v550_v16 }
 0x1fa   :  { %v1518_v19 = vpack.c.bf16 %v1093_v47, %v1093_v47  ;;  %v1091_v41 = vsel %vm278_vm1, %v1090_v61, %v1083_v8  ;;  %v604_v21 = vrot.slane %v3600_v33, 4  ;;  %v1618_v34 = vunpack.c.l.b16 %v1515_v60 }
 0x1fb   :  { %v1516_v55 = vpack.c.bf16 %v1091_v41, %v1091_v41  ;;  %v1569_v48 = vunpack.c.l.b16 %v1501_v40  ;;  %v1570_v18 = vunpack.c.l.b16 %v1502_v17  ;;  %v620_v27 = vperm.slane %v3575_v24, %v3118_v14 }
 0x1fc   :  { %v1662_v59 = vunpack.c.l.b16 %v1518_v19  ;;  %v605_v38 = vsel %vm278_vm1, %v597_v7, %v604_v21  ;;  %v631_v0 = vperm.slane %v627_v58, %v3118_v14  ;;  %v1497_v37 = vpack.c.bf16 %v551_v15, %v551_v15 }
 0x1fd   :  { %v1619_v12 = vunpack.c.l.b16 %v1516_v55  ;;  %v1498_v50 = vpack.c.bf16 %v605_v38, %v605_v38  ;;  %v634_v39 = vrot.slane %v3527_v32, 4  ;;  %v646_v31 = vrot.slane %v625_v1, 4 }
 0x1fe   :  { %v1663_v20 = vpack.c.b16 %v1662_v59, %v1661_v56  ;;  %v674_v33 = vperm.slane %v3520_v28, %v3118_v14  ;;  %v685_v51 = vperm.slane %v3523_v45, %v3118_v14  ;;  %v688_v24 = vrot.slane %v3512_v43, 4 }
 0x1ff   :  { %v1620_v53 = vpack.c.b16 %v1619_v12, %v1618_v34  ;;  %v1572_v42 = vpack.c.b16 %v1570_v18, %v1569_v48  ;;  %v635_v3 = vsel %vm278_vm1, %v620_v27, %v634_v39  ;;  %v647_v30 = vsel %vm278_vm1, %v631_v0, %v646_v31 }
 0x200   :  { %v1671_v7 = vsel %vm1534_vm2, %v1663_v20, 0  ;;  %v700_v13 = vrot.slane %v3515_v6, 4  ;;  %v1525_v57 = vunpack.c.l.b16 %v1497_v37  ;;  %v1526_v28 = vunpack.c.l.b16 %v1498_v50 }
 0x201   :  { %1680 = vmatpush.bf16.xpose.msrb.mxu3 %v1671_v7  ;;  %v1628_v4 = vsel %vm1534_vm2, %v1620_v53, 0  ;;  %v655_v10 = vperm.slane %v647_v30, %v3122_v26  ;;  %v689_v45 = vsel %vm278_vm1, %v674_v33, %v688_v24  ;;  %v632_v49 = vrot.slane %v620_v27, 4 }
 0x202   :  { %1637 = vmatpush.bf16.xpose.msrb.mxu2 %v1628_v4  ;;  %2657 = vmatmul.msk.bf16.gmra.mxu3 %vm1534_vm2, %v1572_v42  ;;  %v701_v25 = vsel %vm278_vm1, %v685_v51, %v700_v13  ;;  %v644_v9 = vrot.slane %v631_v0, 4  ;;  %v643_v52 = vperm.slane %v635_v3, %v3122_v26  ;;  %v686_v54 = vrot.slane %v674_v33, 4 }
 0x203   :  { %v660_v8 = vrot.slane %v655_v10, 4  ;;  %v709_v36 = vperm.slane %v701_v25, %v3122_v26  ;;  %v698_v22 = vrot.slane %v685_v51, 4  ;;  %v697_v44 = vperm.slane %v689_v45, %v3122_v26 }
 0x204   :  { %v645_v29 = vsel %vm278_vm1, %v644_v9, %v625_v1  ;;  %v1528_v2 = vpack.c.b16 %v1526_v28, %v1525_v57  ;;  %v633_v63 = vsel %vm278_vm1, %v632_v49, %v3527_v32  ;;  %v687_v35 = vsel %vm278_vm1, %v686_v54, %v3512_v43 }
 0x205   :  { %v661_v5 = vsel %vm278_vm1, %v660_v8, %v643_v52  ;;  %v714_v46 = vrot.slane %v709_v36, 4  ;;  %v651_v62 = vperm.slane %v645_v29, %v3122_v26  ;;  %v699_v23 = vsel %vm278_vm1, %v698_v22, %v3515_v6 }
 0x206   :  { %v705_v47 = vperm.slane %v699_v23, %v3122_v26  ;;  %v1507_v61 = vpack.c.bf16 %v661_v5, %v661_v5  ;;  %v639_v19 = vperm.slane %v633_v63, %v3122_v26  ;;  %v693_v56 = vperm.slane %v687_v35, %v3122_v26 }
 0x207   :  { %v715_v16 = vsel %vm278_vm1, %v714_v46, %v697_v44  ;;  %v656_v58 = vrot.slane %v651_v62, 4  ;;  %2655 = vmatmul.msk.bf16.gmra.mxu2 %vm1534_vm2, %v1528_v2  ;;  %v662_v21 = vrot.slane %v643_v52, 4  ;;  %v716_v59 = vrot.slane %v697_v44, 4 }
 0x208   :  { %v1508_v60 = vpack.c.bf16 %v715_v16, %v715_v16  ;;  %v710_v32 = vrot.slane %v705_v47, 4  ;;  %v1653_v17 = vunpack.c.l.b16 %v1507_v61  ;;  %v658_v27 = vrot.slane %v639_v19, 4 }
 0x209   :  { %v657_v40 = vsel %vm278_vm1, %v656_v58, %v639_v19  ;;  %v663_v48 = vsel %vm278_vm1, %v655_v10, %v662_v21  ;;  %v717_v18 = vsel %vm278_vm1, %v709_v36, %v716_v59  ;;  %v712_v0 = vrot.slane %v693_v56, 4 }
 0x20a   :  { %v711_v43 = vsel %vm278_vm1, %v710_v32, %v693_v56  ;;  %v1654_v6 = vunpack.c.l.b16 %v1508_v60  ;;  %v1503_v1 = vpack.c.bf16 %v657_v40, %v657_v40  ;;  %v1509_v20 = vpack.c.bf16 %v663_v48, %v663_v48 }
 0x20b   :  { %v1504_v41 = vpack.c.bf16 %v711_v43, %v711_v43  ;;  %v1510_v12 = vpack.c.bf16 %v717_v18, %v717_v18  ;;  %v659_v37 = vsel %vm278_vm1, %v651_v62, %v658_v27  ;;  %v713_v50 = vsel %vm278_vm1, %v705_v47, %v712_v0 }
 0x20c   :  { %v1657_v15 = vpack.c.b16 %v1654_v6, %v1653_v17  ;;  %v1610_v55 = vunpack.c.l.b16 %v1503_v1  ;;  %v1655_v39 = vunpack.c.l.b16 %v1509_v20  ;;  %v1505_v33 = vpack.c.bf16 %v659_v37, %v659_v37 }
 0x20d   :  { %v1611_v34 = vunpack.c.l.b16 %v1504_v41  ;;  %v1656_v31 = vunpack.c.l.b16 %v1510_v12  ;;  %v1506_v51 = vpack.c.bf16 %v713_v50, %v713_v50  ;;  %v1486_v3 = vlaneseq }
 0x20e   :  { %v1612_v53 = vunpack.c.l.b16 %v1505_v33  ;;  %v3038_v4 = vmov -1e+30  }
 0x20f   :  { %v1614_v38 = vpack.c.b16 %v1611_v34, %v1610_v55  ;;  %v1658_v7 = vpack.c.b16 %v1656_v31, %v1655_v39  ;;  %v1613_v24 = vunpack.c.l.b16 %v1506_v51  ;;  %v1487_v30 = vshrl.u32 %v1486_v3, 7  ;;  %v2773_v39 = vpop.permute.xlu1 %2772 }
 0x210   :  { %v1490_v13 = vand.u32 127, %v1486_v3 }
 0x211   :  { %v1615_v42 = vpack.c.b16 %v1613_v24, %v1612_v53  ;;  %v1488_v28 = vadd.s32 8, %v1487_v30 }
 0x212   :  { %2660 = vmatmul.msk.bf16.vlgmr.msrb.gmra.mxu3 %vm1534_vm2, %v1657_v15  ;;  %vm1491_vm3 = vcmp.ge.s32.totalorder %v1487_v30, %v1490_v13 }
 0x213   :  { %v1493_v57 = vsel %vm1491_vm3, 0.0, %v3038_v4  ;;  %vm1492_vm4 = vcmp.ge.s32.totalorder %v1488_v28, %v1490_v13 }
 0x214   :  { %v1494_v9 = vsel %vm1492_vm4, 0.0, %v3038_v4 }
 0x217   :  { %2658 = vmatmul.msk.bf16.vlgmr.msrb.gmra.mxu2 %vm1534_vm2, %v1614_v38  ;;  %v2778_v51 = vpop.permute.xlu1 %2777 }
 0x222   :  { %2661 = vmatmul.msk.bf16.gmra.mxu3 %vm1534_vm2, %v1658_v7  ;;  %v3772_v7 = vpop.permute.xlu2 %2782 }
 0x227   :  { %2659 = vmatmul.msk.bf16.gmra.mxu2 %vm1534_vm2, %v1615_v42 }
 0x274   :  { %v1596_v10 = vpop.f32.mrf.mxu3 }
 0x275   :  { %v3704_v45 = vadd.f32 %v1596_v10, %v1493_v57 }
 0x277   :  { %v1704_v25 = vsel %vm1534_vm2, %v3704_v45, -inf }
 0x278   :  { %1705 = vmax.xlane.f32.xlu2 %v1704_v25 }
 0x27a   :  { %v1553_v49 = vpop.f32.mrf.mxu2 }
 0x27b   :  { %v3708_v52 = vadd.f32 %v1553_v49, %v1493_v57 }
 0x27c   :  { %v1598_v8 = vpop.f32.mrf.mxu3 }
 0x27d   :  { %v1692_v36 = vsel %vm1534_vm2, %v3708_v52, -inf  ;;  %v3712_v29 = vadd.f32 %v1598_v8, %v1494_v9 }
 0x27e   :  { %1693 = vmax.xlane.f32.xlu0 %v1692_v36 }
 0x27f   :  { %v1707_v54 = vsel %vm1534_vm2, %v3712_v29, -inf }
 0x280   :  { %1708 = vmax.xlane.f32.xlu1 %v1707_v54 }
 0x282   :  { %v1555_v22 = vpop.f32.mrf.mxu2 }
 0x283   :  { %v3716_v5 = vadd.f32 %v1555_v22, %v1494_v9 }
 0x285   :  { %v1601_v44 = vpop.f32.mrf.mxu3  ;;  %v1695_v46 = vsel %vm1534_vm2, %v3716_v5, -inf }
 0x286   :  { %1696 = vmax.xlane.f32.xlu2 %v1695_v46  ;;  %v3720_v62 = vadd.f32 %v1601_v44, %v1493_v57 }
 0x288   :  { %v1710_v23 = vsel %vm1534_vm2, %v3720_v62, -inf }
 0x28a   :  { %v1558_v2 = vpop.f32.mrf.mxu2 }
 0x28b   :  { %v3722_v63 = vadd.f32 %v1558_v2, %v1493_v57 }
 0x28d   :  { %v1603_v35 = vpop.f32.mrf.mxu3  ;;  %v1698_v16 = vsel %vm1534_vm2, %v3722_v63, -inf }
 0x28e   :  { %1711 = vmax.xlane.f32.xlu2 %v1710_v23  ;;  %1699 = vmax.xlane.f32.xlu0 %v1698_v16  ;;  %v3728_v58 = vadd.f32 %v1603_v35, %v1494_v9 }
 0x290   :  { %v1713_v56 = vsel %vm1534_vm2, %v3728_v58, -inf }
 0x292   :  { %v1560_v47 = vpop.f32.mrf.mxu2 }
 0x293   :  { %v3730_v61 = vadd.f32 %v1560_v47, %v1494_v9 }
 0x295   :  { %v1682_v60 = vpop.f32.mrf.mxu3  ;;  %v1701_v19 = vsel %vm1534_vm2, %v3730_v61, -inf }
 0x296   :  { %v3736_v32 = vadd.f32 %v1682_v60, %v1493_v57  ;;  %1702 = vmax.xlane.f32.xlu1 %v1701_v19  ;;  %1714 = vmax.xlane.f32.xlu0 %v1713_v56 }
 0x298   :  { %v1728_v40 = vsel %vm1534_vm2, %v3736_v32, -inf }
 0x299   :  { %1729 = vmax.xlane.f32.xlu2 %v1728_v40 }
 0x29a   :  { %v1639_v43 = vpop.f32.mrf.mxu2 }
 0x29b   :  { %v3740_v17 = vadd.f32 %v1639_v43, %v1493_v57 }
 0x29d   :  { %v1684_v6 = vpop.f32.mrf.mxu3  ;;  %v1716_v1 = vsel %vm1534_vm2, %v3740_v17, -inf }
 0x29e   :  { %v3744_v41 = vadd.f32 %v1684_v6, %v1494_v9  ;;  %1717 = vmax.xlane.f32.xlu0 %v1716_v1 }
 0x2a0   :  { %v1731_v15 = vsel %vm1534_vm2, %v3744_v41, -inf }
 0x2a1   :  { %1732 = vmax.xlane.f32.xlu1 %v1731_v15 }
 0x2a2   :  { %v1641_v21 = vpop.f32.mrf.mxu2 }
 0x2a3   :  { %v3748_v59 = vadd.f32 %v1641_v21, %v1494_v9 }
 0x2a5   :  { %v1687_v55 = vpop.f32.mrf.mxu3  ;;  %v1719_v34 = vsel %vm1534_vm2, %v3748_v59, -inf }
 0x2a6   :  { %1720 = vmax.xlane.f32.xlu2 %v1719_v34  ;;  %v3752_v48 = vadd.f32 %v1687_v55, %v1493_v57 }
 0x2a8   :  { %v1734_v0 = vsel %vm1534_vm2, %v3752_v48, -inf }
 0x2aa   :  { %v1644_v18 = vpop.f32.mrf.mxu2 }
 0x2ab   :  { %v3754_v38 = vadd.f32 %v1644_v18, %v1493_v57 }
 0x2ad   :  { %v1689_v27 = vpop.f32.mrf.mxu3  ;;  %v1722_v20 = vsel %vm1534_vm2, %v3754_v38, -inf }
 0x2ae   :  { %v3760_v12 = vadd.f32 %v1689_v27, %v1494_v9  ;;  %1735 = vmax.xlane.f32.xlu2 %v1734_v0  ;;  %1723 = vmax.xlane.f32.xlu0 %v1722_v20 }
 0x2b0   :  { %v1737_v37 = vsel %vm1534_vm2, %v3760_v12, -inf }
 0x2b1   :  { %1738 = vmax.xlane.f32.xlu1 %v1737_v37 }
 0x2b2   :  { %v1646_v50 = vpop.f32.mrf.mxu2 }
 0x2b3   :  { %v3764_v31 = vadd.f32 %v1646_v50, %v1494_v9 }
 0x2b5   :  { %v1725_v33 = vsel %vm1534_vm2, %v3764_v31, -inf }
 0x2b6   :  { %1726 = vmax.xlane.f32.xlu0 %v1725_v33 }
 0x2c6   :  { %2797 = vrot.lane.b32.xlu2 %v2778_v51, %s3031_s11 }
 0x2ca   :  { %2787 = vrot.lane.b32.xlu1 %v2773_v39, %s3031_s11  ;;  %2792 = vrot.lane.b32.xlu0 %v3114_v11, %s3031_s11 }
 0x2eb   :  { %v1706_v53 = vpop.xlane.xlu2 %1705 }
 0x2ec   :  { %v1744_v24 = vsub.f32 %v3704_v45, %v1706_v53 }
 0x2ee   :  { %v1764_v42 = vmul.f32 1.442695, %v1744_v24 }
 0x2f0   :  { %2831 = vpow2.f32 %v1764_v42 }
 0x2f1   :  { %v1694_v3 = vpop.xlane.xlu0 %1693 }
 0x2f2   :  { %v1740_v30 = vsub.f32 %v3708_v52, %v1694_v3 }
 0x2f3   :  { %v1709_v13 = vpop.xlane.xlu1 %1708 }
 0x2f4   :  { %v1756_v4 = vmul.f32 1.442695, %v1740_v30  ;;  %v1745_v57 = vsub.f32 %v3712_v29, %v1709_v13 }
 0x2f6   :  { %v3777_v28 = vpop.eup %2831  ;;  %2833 = vpow2.f32 %v1756_v4  ;;  %v1766_v10 = vmul.f32 1.442695, %v1745_v57 }
 0x2f7   :  { %v1800_v11 = vsel %vm1534_vm2, %v3777_v28, 0.0 }
 0x2f8   :  { %2835 = vpow2.f32 %v1766_v10  ;;  %1801 = vadd.xlane.f32.xlu1 %v1800_v11 }
 0x2f9   :  { %v1697_v25 = vpop.xlane.xlu2 %1696 }
 0x2fa   :  { %v1741_v45 = vsub.f32 %v3716_v5, %v1697_v25 }
 0x2fc   :  { %v3782_v49 = vpop.eup %2833  ;;  %v1758_v9 = vmul.f32 1.442695, %v1741_v45 }
 0x2fd   :  { %v1788_v52 = vsel %vm1534_vm2, %v3782_v49, 0.0 }
 0x2fe   :  { %v3786_v8 = vpop.eup %2835  ;;  %2837 = vpow2.f32 %v1758_v9  ;;  %1789 = vadd.xlane.f32.xlu0 %v1788_v52  ;;  %v2785_v9 = vunpack.i.h.bf16 %v3772_v7 }
 0x2ff   :  { %v1803_v36 = vsel %vm1534_vm2, %v3786_v8, 0.0 }
 0x300   :  { %1804 = vadd.xlane.f32.xlu2 %v1803_v36  ;;  %v2784_v36 = vunpack.i.l.bf16 %v3772_v7 }
 0x301   :  { %v1712_v29 = vpop.xlane.xlu2 %1711  ;;  %v1700_v54 = vpop.xlane.xlu0 %1699 }
 0x302   :  { %v1746_v22 = vsub.f32 %v3720_v62, %v1712_v29  ;;  %v1742_v60 = vsub.f32 %v3722_v63, %v1700_v54 }
 0x304   :  { %v3791_v44 = vpop.eup %2837  ;;  %v1768_v5 = vmul.f32 1.442695, %v1746_v22  ;;  %v1760_v56 = vmul.f32 1.442695, %v1742_v60 }
 0x305   :  { %v1791_v46 = vsel %vm1534_vm2, %v3791_v44, 0.0 }
 0x306   :  { %2839 = vpow2.f32 %v1768_v5  ;;  %1792 = vadd.xlane.f32.xlu1 %v1791_v46 }
 0x309   :  { %v1715_v2 = vpop.xlane.xlu0 %1714  ;;  %v1703_v35 = vpop.xlane.xlu1 %1702 }
 0x30a   :  { %v1747_v21 = vsub.f32 %v3728_v58, %v1715_v2  ;;  %v1126_v2 = vrot.slane %v2785_v9, 4 }
 0x30c   :  { %v1730_v23 = vpop.xlane.xlu2 %1729  ;;  %v3795_v16 = vpop.eup %2839  ;;  %v1770_v34 = vmul.f32 1.442695, %v1747_v21  ;;  %v1127_v60 = vsel %vm278_vm1, 0.0, %v1126_v2 }
 0x30d   :  { %v1752_v47 = vsub.f32 %v3736_v32, %v1730_v23  ;;  %v1806_v62 = vsel %vm1534_vm2, %v3795_v16, 0.0 }
 0x30e   :  { %1807 = vadd.xlane.f32.xlu1 %v1806_v62 }
 0x30f   :  { %v1780_v19 = vmul.f32 1.442695, %v1752_v47 }
 0x311   :  { %2841 = vpow2.f32 %v1780_v19  ;;  %v1718_v40 = vpop.xlane.xlu0 %1717 }
 0x312   :  { %v1748_v43 = vsub.f32 %v3740_v17, %v1718_v40  ;;  %2843 = vpow2.f32 %v1760_v56 }
 0x314   :  { %v1733_v6 = vpop.xlane.xlu1 %1732  ;;  %v1772_v1 = vmul.f32 1.442695, %v1748_v43 }
 0x315   :  { %v1753_v15 = vsub.f32 %v3744_v41, %v1733_v6  ;;  %v1743_v41 = vsub.f32 %v3730_v61, %v1703_v35  ;;  %v1178_v35 = vrot.slane %v2784_v36, 4  ;;  %v3860_v6 = vperm.slane %v2785_v9, %v3118_v14 }
 0x316   :  { %2845 = vpow2.f32 %v1772_v1  ;;  %v3863_v1 = vperm.slane %v1127_v60, %v3118_v14 }
 0x317   :  { %v3804_v32 = vpop.eup %2841  ;;  %v1782_v55 = vmul.f32 1.442695, %v1753_v15  ;;  %v1762_v50 = vmul.f32 1.442695, %v1743_v41  ;;  %v1179_v19 = vsel %vm278_vm1, 0.0, %v1178_v35  ;;  %v3866_v15 = vperm.slane %v2784_v36, %v3118_v14 }
 0x318   :  { %v1824_v63 = vsel %vm1534_vm2, %v3804_v32, 0.0  ;;  %v3809_v17 = vpop.eup %2843  ;;  %v1148_v41 = vrot.slane %v3860_v6, 4 }
 0x319   :  { %1825 = vadd.xlane.f32.xlu0 %v1824_v63  ;;  %v1721_v18 = vpop.xlane.xlu2 %1720  ;;  %2847 = vpow2.f32 %v1782_v55  ;;  %v1794_v37 = vsel %vm1534_vm2, %v3809_v17, 0.0  ;;  %v3870_v63 = vperm.slane %v1179_v19, %v3118_v14 }
 0x31a   :  { %v1749_v27 = vsub.f32 %v3748_v59, %v1721_v18  ;;  %2849 = vpow2.f32 %v1770_v34 }
 0x31c   :  { %v3811_v0 = vpop.eup %2845  ;;  %v1774_v58 = vmul.f32 1.442695, %v1749_v27 }
 0x31d   :  { %v1812_v20 = vsel %vm1534_vm2, %v3811_v0, 0.0 }
 0x31e   :  { %2851 = vpow2.f32 %v1774_v58  ;;  %1813 = vadd.xlane.f32.xlu2 %v1812_v20  ;;  %v1160_v58 = vrot.slane %v3863_v1, 4  ;;  %v1200_v20 = vrot.slane %v3866_v15, 4 }
 0x31f   :  { %v3818_v33 = vpop.eup %2847  ;;  %2853 = vpow2.f32 %v1762_v50  ;;  %v1212_v50 = vrot.slane %v3870_v63, 4 }
 0x320   :  { %v3822_v53 = vpop.eup %2849  ;;  %v1827_v57 = vsel %vm1534_vm2, %v3818_v33, 0.0 }
 0x321   :  { %1795 = vadd.xlane.f32.xlu0 %v1794_v37  ;;  %v1736_v59 = vpop.xlane.xlu2 %1735  ;;  %v1724_v39 = vpop.xlane.xlu0 %1723 }
 0x322   :  { %v1754_v51 = vsub.f32 %v3752_v48, %v1736_v59  ;;  %v1750_v61 = vsub.f32 %v3754_v38, %v1724_v39  ;;  %v1809_v48 = vsel %vm1534_vm2, %v3822_v53, 0.0 }
 0x324   :  { %v1739_v24 = vpop.xlane.xlu1 %1738  ;;  %v3824_v42 = vpop.eup %2851  ;;  %v1784_v3 = vmul.f32 1.442695, %v1754_v51  ;;  %v1776_v30 = vmul.f32 1.442695, %v1750_v61 }
 0x325   :  { %v1755_v13 = vsub.f32 %v3760_v12, %v1739_v24  ;;  %v1815_v4 = vsel %vm1534_vm2, %v3824_v42, 0.0  ;;  %v3833_v11 = vpop.eup %2853 }
 0x326   :  { %2855 = vpow2.f32 %v1784_v3  ;;  %1816 = vadd.xlane.f32.xlu1 %v1815_v4  ;;  %1828 = vadd.xlane.f32.xlu2 %v1827_v57  ;;  %v1797_v22 = vsel %vm1534_vm2, %v3833_v11, 0.0 }
 0x327   :  { %2857 = vpow2.f32 %v1776_v30  ;;  %v1786_v38 = vmul.f32 1.442695, %v1755_v13 }
 0x329   :  { %1810 = vadd.xlane.f32.xlu0 %v1809_v48  ;;  %v1727_v10 = vpop.xlane.xlu0 %1726  ;;  %v2798_v25 = vpop.permute.xlu2 %2797  ;;  %2859 = vpow2.f32 %v1786_v38 }
 0x32a   :  { %v1751_v12 = vsub.f32 %v3764_v31, %v1727_v10  ;;  %v2800_v5 = vunpack.i.h.bf16 %v2798_v25  ;;  %v2799_v31 = vunpack.i.l.bf16 %v2798_v25 }
 0x32c   :  { %v3836_v45 = vpop.eup %2855  ;;  %v1778_v29 = vmul.f32 1.442695, %v1751_v12  ;;  %v1240_v7 = vrot.slane %v2800_v5, 4  ;;  %v1292_v47 = vrot.slane %v2799_v31, 4  ;;  %v1245_v55 = vperm.slane %v2800_v5, %v3118_v14 }
 0x32d   :  { %v3839_v52 = vpop.eup %2857  ;;  %v1830_v54 = vsel %vm1534_vm2, %v3836_v45, 0.0  ;;  %v1297_v18 = vperm.slane %v2799_v31, %v3118_v14 }
 0x32e   :  { %1831 = vadd.xlane.f32.xlu1 %v1830_v54  ;;  %1798 = vadd.xlane.f32.xlu2 %v1797_v22  ;;  %2861 = vpow2.f32 %v1778_v29  ;;  %v1818_v46 = vsel %vm1534_vm2, %v3839_v52, 0.0  ;;  %v1241_v40 = vsel %vm278_vm1, 0.0, %v1240_v7  ;;  %v1293_v21 = vsel %vm278_vm1, 0.0, %v1292_v47 }
 0x32f   :  { %v3848_v23 = vpop.eup %2859  ;;  %v1249_v34 = vperm.slane %v1241_v40, %v3118_v14  ;;  %v1301_v27 = vperm.slane %v1293_v21, %v3118_v14  ;;  %v1250_v59 = vrot.slane %v1245_v55, 4  ;;  %v1302_v3 = vrot.slane %v1297_v18, 4 }
 0x330   :  { %v1833_v56 = vsel %vm1534_vm2, %v3848_v23, 0.0 }
 0x331   :  { %1819 = vadd.xlane.f32.xlu0 %v1818_v46  ;;  %v1262_v24 = vrot.slane %v1249_v34, 4  ;;  %v1314_v4 = vrot.slane %v1301_v27, 4 }
 0x334   :  { %v3851_v62 = vpop.eup %2861 }
 0x335   :  { %v1821_v43 = vsel %vm1534_vm2, %v3851_v62, 0.0 }
 0x336   :  { %1834 = vadd.xlane.f32.xlu2 %v1833_v56  ;;  %1822 = vadd.xlane.f32.xlu1 %v1821_v43 }
 0x33c   :  { %v2788_v37 = vpop.permute.xlu1 %2787  ;;  %v2793_v39 = vpop.permute.xlu0 %2792 }
 0x33d   :  { %v2790_v51 = vunpack.i.h.bf16 %v2788_v37  ;;  %v2789_v61 = vunpack.i.l.bf16 %v2788_v37  ;;  %v2795_v30 = vunpack.i.h.bf16 %v2793_v39  ;;  %v2794_v13 = vunpack.i.l.bf16 %v2793_v39 }
 0x33f   :  { %v1136_v57 = vrot.slane %v2790_v51, 4  ;;  %v1141_v48 = vperm.slane %v2790_v51, %v3118_v14  ;;  %v1188_v38 = vrot.slane %v2789_v61, 4  ;;  %v1230_v10 = vrot.slane %v2795_v30, 4 }
 0x340   :  { %v1235_v12 = vperm.slane %v2795_v30, %v3118_v14  ;;  %v1282_v25 = vrot.slane %v2794_v13, 4  ;;  %v1287_v9 = vperm.slane %v2794_v13, %v3118_v14  ;;  %v3886_v22 = vperm.slane %v2789_v61, %v3118_v14 }
 0x341   :  { %v1137_v36 = vsel %vm278_vm1, 0.0, %v1136_v57  ;;  %v1146_v29 = vrot.slane %v1141_v48, 4  ;;  %v1149_v54 = vsel %vm278_vm1, %v1141_v48, %v1148_v41  ;;  %v1231_v5 = vsel %vm278_vm1, 0.0, %v1230_v10 }
 0x342   :  { %v1251_v31 = vsel %vm278_vm1, %v1250_v59, %v1235_v12  ;;  %v1252_v46 = vrot.slane %v1235_v12, 4  ;;  %v1283_v2 = vsel %vm278_vm1, 0.0, %v1282_v25  ;;  %v1239_v35 = vperm.slane %v1231_v5, %v3118_v14 }
 0x343   :  { %v1257_v7 = vperm.slane %v1251_v31, %v3122_v26  ;;  %v1291_v47 = vperm.slane %v1283_v2, %v3118_v14  ;;  %v1303_v60 = vsel %vm278_vm1, %v1302_v3, %v1287_v9  ;;  %v1304_v56 = vrot.slane %v1287_v9, 4 }
 0x344   :  { %v1253_v19 = vsel %vm278_vm1, %v1245_v55, %v1252_v46  ;;  %v1309_v40 = vperm.slane %v1303_v60, %v3122_v26  ;;  %v1189_v43 = vsel %vm278_vm1, 0.0, %v1188_v38  ;;  %v1263_v41 = vsel %vm278_vm1, %v1262_v24, %v1239_v35 }
 0x345   :  { %v1261_v21 = vperm.slane %v1253_v19, %v3122_v26  ;;  %v1264_v37 = vrot.slane %v1239_v35, 4  ;;  %v1274_v59 = vrot.slane %v1257_v7, 4  ;;  %v3901_v39 = vperm.slane %v1263_v41, %v3122_v26 }
 0x346   :  { %v1305_v51 = vsel %vm278_vm1, %v1297_v18, %v1304_v56  ;;  %v1315_v61 = vsel %vm278_vm1, %v1314_v4, %v1291_v47  ;;  %v1316_v3 = vrot.slane %v1291_v47, 4  ;;  %v1145_v57 = vperm.slane %v1137_v36, %v3118_v14 }
 0x347   :  { %v1265_v55 = vsel %vm278_vm1, %v1249_v34, %v1264_v37  ;;  %v1276_v30 = vrot.slane %v1261_v21, 4  ;;  %v1313_v13 = vperm.slane %v1305_v51, %v3122_v26  ;;  %v3910_v24 = vsel %vm278_vm1, 0.0, %v1274_v59 }
 0x348   :  { %v1273_v48 = vperm.slane %v1265_v55, %v3122_v26  ;;  %v1317_v38 = vsel %vm278_vm1, %v1301_v27, %v1316_v3  ;;  %v1321_v10 = vperm.slane %v1315_v61, %v3122_v26  ;;  %v1278_v4 = vrot.slane %v3901_v39, 4 }
 0x349   :  { %v3915_v18 = vsel %vm278_vm1, 0.0, %v1276_v30  ;;  %v1325_v34 = vperm.slane %v1317_v38, %v3122_v26  ;;  %v1326_v12 = vrot.slane %v1309_v40, 4  ;;  %v3922_v9 = vsel %vm278_vm1, %v1276_v30, %v1257_v7 }
 0x34a   :  { %v3919_v25 = vrot.slane %v1273_v48, 4  ;;  %v1328_v36 = vrot.slane %v1313_v13, 4  ;;  %v1330_v5 = vrot.slane %v1321_v10, 4  ;;  %v1415_v31 = vrot.slane %v3915_v18, 4 }
 0x34b   :  { %v1332_v27 = vrot.slane %v1325_v34, 4  ;;  %v1147_v46 = vsel %vm278_vm1, %v1146_v29, %v3860_v6  ;;  %v1157_v2 = vperm.slane %v1149_v54, %v3122_v26  ;;  %v1327_v47 = vsel %vm278_vm1, 0.0, %v1326_v12 }
 0x34c   :  { %v3930_v35 = vsel %vm278_vm1, 0.0, %v3919_v25  ;;  %v1329_v60 = vsel %vm278_vm1, 0.0, %v1328_v36  ;;  %v1448_v7 = vsel %vm278_vm1, %v1328_v36, %v1309_v40  ;;  %v1331_v56 = vsel %vm278_vm1, 0.0, %v1330_v5 }
 0x34d   :  { %v1426_v19 = vrot.slane %v3930_v35, 4  ;;  %v1333_v21 = vsel %vm278_vm1, 0.0, %v1332_v27  ;;  %v1453_v41 = vrot.slane %v1329_v60, 4  ;;  %v1452_v6 = vperm.slane %v1448_v7, %v3118_v14 }
 0x34e   :  { %v1153_v29 = vperm.slane %v1147_v46, %v3122_v26  ;;  %v1158_v54 = vrot.slane %v1145_v57, 4  ;;  %v1161_v37 = vsel %vm278_vm1, %v1145_v57, %v1160_v58  ;;  %v1464_v59 = vrot.slane %v1333_v21, 4 }
 0x34f   :  { %v1169_v51 = vperm.slane %v1161_v37, %v3122_v26  ;;  %v1172_v40 = vrot.slane %v1157_v2, 4  ;;  %v1197_v61 = vperm.slane %v1189_v43, %v3118_v14  ;;  %v1198_v30 = vrot.slane %v3886_v22, 4 }
 0x350   :  { %v1159_v3 = vsel %vm278_vm1, %v1158_v54, %v3863_v1  ;;  %v1170_v55 = vrot.slane %v1153_v29, 4  ;;  %v1201_v13 = vsel %vm278_vm1, %v3886_v22, %v1200_v20  ;;  %v1454_v48 = vsel %vm278_vm1, %v1453_v41, %v1327_v47 }
 0x351   :  { %v3954_v58 = vperm.slane %v1159_v3, %v3122_v26  ;;  %v3957_v57 = vsel %vm278_vm1, 0.0, %v1172_v40  ;;  %v3959_v43 = vrot.slane %v1169_v51, 4  ;;  %v3965_v38 = vsel %vm278_vm1, %v1172_v40, %v1153_v29 }
 0x352   :  { %v3962_v1 = vsel %vm278_vm1, 0.0, %v1170_v55  ;;  %v1199_v34 = vsel %vm278_vm1, %v1198_v30, %v3866_v15  ;;  %v1209_v20 = vperm.slane %v1201_v13, %v3122_v26  ;;  %v1339_v12 = vrot.slane %v3957_v57, 4 }
 0x353   :  { %v3972_v22 = vsel %vm278_vm1, 0.0, %v3959_v43  ;;  %v1205_v36 = vperm.slane %v1199_v34, %v3122_v26  ;;  %v1210_v5 = vrot.slane %v1197_v61, 4  ;;  %v1174_v46 = vrot.slane %v3954_v58, 4 }
 0x354   :  { %v1213_v2 = vsel %vm278_vm1, %v1197_v61, %v1212_v50  ;;  %v1224_v47 = vrot.slane %v1209_v20, 4  ;;  %v1458_v15 = vperm.slane %v1454_v48, %v3118_v14  ;;  %v1459_v41 = vsel %vm278_vm1, %v1332_v27, %v1321_v10 }
 0x355   :  { %v1211_v60 = vsel %vm278_vm1, %v1210_v5, %v3870_v63  ;;  %v1221_v7 = vperm.slane %v1213_v2, %v3122_v26  ;;  %v1222_v21 = vrot.slane %v1205_v36, 4  ;;  %v1350_v29 = vrot.slane %v3972_v22, 4 }
 0x356   :  { %v1217_v54 = vperm.slane %v1211_v60, %v3122_v26  ;;  %v1225_v37 = vsel %vm278_vm1, 0.0, %v1224_v47  ;;  %v1372_v51 = vsel %vm278_vm1, %v1224_v47, %v1205_v36  ;;  %v1463_v3 = vperm.slane %v1459_v41, %v3118_v14 }
 0x357   :  { %v1223_v50 = vsel %vm278_vm1, 0.0, %v1222_v21  ;;  %v1228_v40 = vrot.slane %v1221_v7, 4  ;;  %v1377_v61 = vrot.slane %v1225_v37, 4  ;;  %v1376_v55 = vperm.slane %v1372_v51, %v3118_v14 }
 0x358   :  { %v1226_v63 = vrot.slane %v1217_v54, 4  ;;  %v1465_v30 = vsel %vm278_vm1, %v1464_v59, %v1331_v56  ;;  %v1470_v10 = vrot.slane %v1458_v15, 4  ;;  %v1279_v59 = vsel %vm278_vm1, 0.0, %v1278_v4 }
 0x359   :  { %v1229_v27 = vsel %vm278_vm1, 0.0, %v1228_v40  ;;  %v1378_v13 = vsel %vm278_vm1, %v1377_v61, %v1223_v50  ;;  %v1469_v48 = vperm.slane %v1465_v30, %v3118_v14  ;;  %v1383_v34 = vsel %vm278_vm1, %v1228_v40, %v1217_v54 }
 0x35a   :  { %v1388_v20 = vrot.slane %v1229_v27, 4  ;;  %v1471_v22 = vsel %vm278_vm1, %v1470_v10, %v1452_v6  ;;  %v1227_v36 = vsel %vm278_vm1, 0.0, %v1226_v63  ;;  %v1382_v5 = vperm.slane %v1378_v13, %v3118_v14 }
 0x35b   :  { %v1475_v2 = vperm.slane %v1471_v22, %v3122_v26  ;;  %v1476_v47 = vrot.slane %v1469_v48, 4  ;;  %v1387_v56 = vperm.slane %v1383_v34, %v3118_v14  ;;  %v1416_v6 = vsel %vm278_vm1, %v1415_v31, %v3910_v24 }
 0x35c   :  { %v1389_v15 = vsel %vm278_vm1, %v1388_v20, %v1227_v36  ;;  %v1394_v60 = vrot.slane %v1382_v5, 4  ;;  %v1421_v7 = vsel %vm278_vm1, %v3919_v25, %v3901_v39  ;;  %v1420_v37 = vperm.slane %v1416_v6, %v3118_v14 }
 0x35d   :  { %v1477_v21 = vsel %vm278_vm1, %v1476_v47, %v1463_v3  ;;  %v1484_v41 = vrot.slane %v1475_v2, 4  ;;  %v1393_v54 = vperm.slane %v1389_v15, %v3118_v14  ;;  %v1414_v18 = vperm.slane %v3922_v9, %v3118_v14 }
 0x35e   :  { %v1481_v4 = vperm.slane %v1477_v21, %v3122_v26  ;;  %v1395_v51 = vsel %vm278_vm1, %v1394_v60, %v1376_v55  ;;  %v1427_v24 = vsel %vm278_vm1, %v1426_v19, %v1279_v59  ;;  %v1432_v50 = vrot.slane %v1420_v37, 4 }
 0x35f   :  { %v1399_v39 = vperm.slane %v1395_v51, %v3122_v26  ;;  %v1400_v25 = vrot.slane %v1393_v54, 4  ;;  %v1431_v31 = vperm.slane %v1427_v24, %v3118_v14  ;;  %v1425_v3 = vperm.slane %v1421_v7, %v3118_v14 }
 0x360   :  { %v1485_v40 = vsel %vm278_vm1, %v1481_v4, %v1484_v41  ;;  %v1482_v61 = vrot.slane %v1481_v4, 4  ;;  %v1175_v63 = vsel %vm278_vm1, 0.0, %v1174_v46  ;;  %v1433_v35 = vsel %vm278_vm1, %v1432_v50, %v1414_v18 }
 0x361   :  { %2017 = vmatpush.msra.mxu3 %v1485_v40  ;;  %v1401_v9 = vsel %vm278_vm1, %v1400_v25, %v1387_v56  ;;  %v1408_v55 = vrot.slane %v1399_v39, 4  ;;  %v1438_v19 = vrot.slane %v1431_v31, 4  ;;  %v1437_v27 = vperm.slane %v1433_v35, %v3122_v26 }
 0x362   :  { %v1405_v30 = vperm.slane %v1401_v9, %v3122_v26  ;;  %v1483_v10 = vsel %vm278_vm1, %v1482_v61, %v1475_v2  ;;  %v1340_v13 = vsel %vm278_vm1, %v1339_v12, %v3962_v1  ;;  %v1345_v34 = vsel %vm278_vm1, %v3959_v43, %v3954_v58 }
 0x363   :  { %1976 = vmatpush.msra.mxu2 %v1483_v10  ;;  %v1439_v46 = vsel %vm278_vm1, %v1438_v19, %v1425_v3  ;;  %v1344_v48 = vperm.slane %v1340_v13, %v3118_v14  ;;  %v1351_v20 = vsel %vm278_vm1, %v1350_v29, %v1175_v63  ;;  %v1446_v5 = vrot.slane %v1437_v27, 4 }
 0x364   :  { %v1409_v22 = vsel %vm278_vm1, %v1405_v30, %v1408_v55  ;;  %v1443_v36 = vperm.slane %v1439_v46, %v3122_v26  ;;  %v1406_v2 = vrot.slane %v1405_v30, 4  ;;  %v1338_v57 = vperm.slane %v3965_v38, %v3118_v14 }
 0x365   :  { %1935 = vmatpush.msra.mxu1 %v1409_v22  ;;  %v1355_v1 = vperm.slane %v1351_v20, %v3118_v14  ;;  %v1356_v12 = vrot.slane %v1344_v48, 4  ;;  %v1349_v43 = vperm.slane %v1345_v34, %v3118_v14 }
 0x366   :  { %v1447_v47 = vsel %vm278_vm1, %v1443_v36, %v1446_v5  ;;  %v1407_v56 = vsel %vm278_vm1, %v1406_v2, %v1399_v39  ;;  %v1444_v58 = vrot.slane %v1443_v36, 4 }
 0x367   :  { %2018 = vmatpush.msra.mxu3 %v1447_v47  ;;  %1894 = vmatpush.msrb.mxu0 %v1407_v56  ;;  %v1357_v29 = vsel %vm278_vm1, %v1356_v12, %v1338_v57  ;;  %v1362_v59 = vrot.slane %v1355_v1, 4 }
 0x368   :  { %v1361_v15 = vperm.slane %v1357_v29, %v3122_v26  ;;  %v1445_v60 = vsel %vm278_vm1, %v1444_v58, %v1437_v27 }
 0x369   :  { %v1363_v38 = vsel %vm278_vm1, %v1362_v59, %v1349_v43  ;;  %1977 = vmatpush.msra.mxu2 %v1445_v60 }
 0x36a   :  { %v1367_v6 = vperm.slane %v1363_v38, %v3122_v26  ;;  %v1370_v7 = vrot.slane %v1361_v15, 4 }
 0x36b   :  { %v1802_v54 = vpop.xlane.xlu1 %1801 }
 0x36c   :  { %v1371_v21 = vsel %vm278_vm1, %v1367_v6, %v1370_v7  ;;  %v1368_v41 = vrot.slane %v1367_v6, 4  ;;  %2863 = vrcp.f32 %v1802_v54 }
 0x36d   :  { %1936 = vmatpush.msra.mxu1 %v1371_v21 }
 0x36e   :  { %v1369_v37 = vsel %vm278_vm1, %v1368_v41, %v1361_v15 }
 0x36f   :  { %1895 = vmatpush.msrb.mxu0 %v1369_v37 }
 0x371   :  { %v1790_v4 = vpop.xlane.xlu0 %1789 }
 0x372   :  { %v2864_v51 = vpop.eup %2863  ;;  %2865 = vrcp.f32 %v1790_v4 }
 0x373   :  { %v1856_v18 = vmul.f32 %v2864_v51, %v3777_v28  ;;  %v1805_v24 = vpop.xlane.xlu2 %1804 }
 0x374   :  { %2867 = vrcp.f32 %v1805_v24 }
 0x375   :  { %2666 = vmatmul.msk.f32.vlgmr.msra.gmra.mxu1 %vm1534_vm2, %v1856_v18 }
 0x378   :  { %v2866_v39 = vpop.eup %2865 }
 0x379   :  { %v1793_v25 = vpop.xlane.xlu1 %1792  ;;  %v1852_v31 = vmul.f32 %v2866_v39, %v3782_v49 }
 0x37a   :  { %v2868_v50 = vpop.eup %2867  ;;  %2869 = vrcp.f32 %v1793_v25 }
 0x37b   :  { %2662 = vmatmul.msk.f32.vlgmr.msrb.gmra.mxu0 %vm1534_vm2, %v1852_v31  ;;  %v1857_v40 = vmul.f32 %v2868_v50, %v3786_v8 }
 0x37d   :  { %2667 = vmatmul.msk.f32.gmra.mxu1 %vm1534_vm2, %v1857_v40 }
 0x380   :  { %v2870_v61 = vpop.eup %2869 }
 0x381   :  { %v1808_v3 = vpop.xlane.xlu1 %1807  ;;  %v1853_v28 = vmul.f32 %v2870_v61, %v3791_v44 }
 0x382   :  { %2871 = vrcp.f32 %v1808_v3 }
 0x383   :  { %2663 = vmatmul.msk.f32.gmra.mxu0 %vm1534_vm2, %v1853_v28 }
 0x388   :  { %v2872_v63 = vpop.eup %2871 }
 0x389   :  { %v1858_v9 = vmul.f32 %v2872_v63, %v3795_v16 }
 0x38b   :  { %2668 = vmatmul.msk.f32.gmra.mxu1 %vm1534_vm2, %v1858_v9 }
 0x38c   :  { %v1826_v49 = vpop.xlane.xlu0 %1825 }
 0x38d   :  { %2873 = vrcp.f32 %v1826_v49 }
 0x391   :  { %v1814_v55 = vpop.xlane.xlu2 %1813 }
 0x392   :  { %2875 = vrcp.f32 %v1814_v55 }
 0x393   :  { %v2874_v35 = vpop.eup %2873 }
 0x394   :  { %v1864_v8 = vmul.f32 %v2874_v35, %v3804_v32  ;;  %v1796_v19 = vpop.xlane.xlu0 %1795 }
 0x395   :  { %2877 = vrcp.f32 %v1796_v19 }
 0x396   :  { %2674 = vmatmul.msk.f32.vlgmr.msra.gmra.mxu3 %vm1534_vm2, %v1864_v8 }
 0x398   :  { %v2876_v44 = vpop.eup %2875 }
 0x399   :  { %v1860_v30 = vmul.f32 %v2876_v44, %v3811_v0  ;;  %v1817_v10 = vpop.xlane.xlu1 %1816  ;;  %v1829_v27 = vpop.xlane.xlu2 %1828 }
 0x39a   :  { %2879 = vrcp.f32 %v1817_v10 }
 0x39b   :  { %v2878_v13 = vpop.eup %2877  ;;  %2881 = vrcp.f32 %v1829_v27  ;;  %2670 = vmatmul.msk.f32.vlgmr.msra.gmra.mxu2 %vm1534_vm2, %v1860_v30 }
 0x39c   :  { %v1811_v16 = vpop.xlane.xlu0 %1810  ;;  %v1854_v46 = vmul.f32 %v2878_v13, %v3809_v17 }
 0x39d   :  { %2883 = vrcp.f32 %v1811_v16 }
 0x39e   :  { %2664 = vmatmul.msk.f32.gmra.mxu0 %vm1534_vm2, %v1854_v46 }
 0x3a0   :  { %v2880_v32 = vpop.eup %2879 }
 0x3a1   :  { %v2882_v48 = vpop.eup %2881  ;;  %v1832_v34 = vpop.xlane.xlu1 %1831  ;;  %v1861_v22 = vmul.f32 %v2880_v32, %v3824_v42 }
 0x3a2   :  { %v1799_v20 = vpop.xlane.xlu2 %1798  ;;  %2885 = vrcp.f32 %v1832_v34  ;;  %v1865_v36 = vmul.f32 %v2882_v48, %v3818_v33 }
 0x3a3   :  { %v2884_v0 = vpop.eup %2883  ;;  %2887 = vrcp.f32 %v1799_v20  ;;  %2671 = vmatmul.msk.f32.gmra.mxu2 %vm1534_vm2, %v1861_v22 }
 0x3a4   :  { %v1820_v5 = vpop.xlane.xlu0 %1819  ;;  %v1859_v2 = vmul.f32 %v2884_v0, %v3822_v53  ;;  %2675 = vmatmul.msk.f32.gmra.mxu3 %vm1534_vm2, %v1865_v36 }
 0x3a5   :  { %2889 = vrcp.f32 %v1820_v5 }
 0x3a6   :  { %2669 = vmatmul.msk.f32.gmra.mxu1 %vm1534_vm2, %v1859_v2 }
 0x3a8   :  { %v2886_v17 = vpop.eup %2885 }
 0x3a9   :  { %v2888_v57 = vpop.eup %2887  ;;  %v1866_v42 = vmul.f32 %v2886_v17, %v3836_v45  ;;  %v1823_v47 = vpop.xlane.xlu1 %1822 }
 0x3aa   :  { %v1835_v1 = vpop.xlane.xlu2 %1834  ;;  %v1855_v33 = vmul.f32 %v2888_v57, %v3833_v11 }
 0x3ab   :  { %v2890_v12 = vpop.eup %2889  ;;  %2891 = vrcp.f32 %v1835_v1 }
 0x3ac   :  { %2893 = vrcp.f32 %v1823_v47  ;;  %v1862_v56 = vmul.f32 %v2890_v12, %v3839_v52  ;;  %2665 = vmatmul.msk.f32.gmra.mxu0 %vm1534_vm2, %v1855_v33  ;;  %2676 = vmatmul.msk.f32.gmra.mxu3 %vm1534_vm2, %v1866_v42 }
 0x3ae   :  { %2672 = vmatmul.msk.f32.gmra.mxu2 %vm1534_vm2, %v1862_v56 }
 0x3b1   :  { %v2892_v53 = vpop.eup %2891 }
 0x3b2   :  { %v2894_v58 = vpop.eup %2893  ;;  %v1867_v43 = vmul.f32 %v2892_v53, %v3848_v23 }
 0x3b3   :  { %v1863_v45 = vmul.f32 %v2894_v58, %v3851_v62 }
 0x3b4   :  { %2677 = vmatmul.msk.f32.gmra.mxu3 %vm1534_vm2, %v1867_v43 }
 0x3b6   :  { %2673 = vmatmul.msk.f32.gmra.mxu2 %vm1534_vm2, %v1863_v45 }
 0x3f2   :  { %v1938_v11 = vpop.f32.mrf.mxu1 }
 0x3f3   :  { %v2032_v52 = vrot.slane %v1938_v11, 4 }
 0x3f8   :  { %v1897_v29 = vpop.f32.mrf.mxu0 }
 0x3f9   :  { %v2034_v15 = vrot.slane %v1897_v29, 4  ;;  %v2033_v38 = vsel %vm278_vm1, %v2032_v52, %v1897_v29 }
 0x3fa   :  { %v1941_v59 = vpop.f32.mrf.mxu1  ;;  %v2039_v23 = vperm.slane %v2033_v38, %v3118_v14 }
 0x3fb   :  { %v2035_v6 = vsel %vm278_vm1, %v1938_v11, %v2034_v15  ;;  %v2088_v21 = vrot.slane %v1941_v59, 4 }
 0x3fc   :  { %v2043_v62 = vperm.slane %v2035_v6, %v3118_v14  ;;  %v2058_v39 = vrot.slane %v2039_v23, 4 }
 0x3fe   :  { %v2070_v31 = vrot.slane %v2043_v62, 4 }
 0x400   :  { %v1900_v60 = vpop.f32.mrf.mxu0 }
 0x401   :  { %v2089_v4 = vsel %vm278_vm1, %v2088_v21, %v1900_v60  ;;  %v2090_v51 = vrot.slane %v1900_v60, 4 }
 0x402   :  { %v4099_v61 = vperm.slane %v2089_v4, %v3118_v14 }
 0x403   :  { %v2091_v49 = vsel %vm278_vm1, %v1941_v59, %v2090_v51 }
 0x404   :  { %v4111_v16 = vperm.slane %v2091_v49, %v3118_v14  ;;  %v2114_v46 = vrot.slane %v4099_v61, 4 }
 0x406   :  { %v2126_v51 = vrot.slane %v4111_v16, 4 }
 0x408   :  { %v1944_v7 = vpop.f32.mrf.mxu1 }
 0x409   :  { %v2044_v41 = vrot.slane %v1944_v7, 4 }
 0x419   :  { %v2020_v54 = vpop.f32.mrf.mxu3 }
 0x41a   :  { %v2144_v50 = vrot.slane %v2020_v54, 4 }
 0x41b   :  { %v1903_v37 = vpop.f32.mrf.mxu0 }
 0x41c   :  { %v2045_v18 = vsel %vm278_vm1, %v2044_v41, %v1903_v37  ;;  %v2046_v24 = vrot.slane %v1903_v37, 4 }
 0x41d   :  { %v2051_v25 = vperm.slane %v2045_v18, %v3118_v14 }
 0x41e   :  { %v2047_v40 = vsel %vm278_vm1, %v1944_v7, %v2046_v24  ;;  %v1979_v9 = vpop.f32.mrf.mxu2 }
 0x41f   :  { %v2055_v3 = vperm.slane %v2047_v40, %v3118_v14  ;;  %v2056_v28 = vrot.slane %v2051_v25, 4  ;;  %v2059_v63 = vsel %vm278_vm1, %v2051_v25, %v2058_v39  ;;  %v2146_v44 = vrot.slane %v1979_v9, 4 }
 0x420   :  { %v2067_v55 = vperm.slane %v2059_v63, %v3122_v26  ;;  %v2145_v13 = vsel %vm278_vm1, %v2144_v50, %v1979_v9 }
 0x421   :  { %v2057_v35 = vsel %vm278_vm1, %v2056_v28, %v2039_v23  ;;  %v2068_v8 = vrot.slane %v2055_v3, 4  ;;  %v2071_v19 = vsel %vm278_vm1, %v2055_v3, %v2070_v31  ;;  %v2147_v2 = vsel %vm278_vm1, %v2020_v54, %v2146_v44 }
 0x422   :  { %v2063_v30 = vperm.slane %v2057_v35, %v3122_v26  ;;  %v2079_v10 = vperm.slane %v2071_v19, %v3122_v26  ;;  %v2082_v27 = vrot.slane %v2067_v55, 4  ;;  %v4120_v17 = vperm.slane %v2145_v13, %v3118_v14 }
 0x423   :  { %v2069_v32 = vsel %vm278_vm1, %v2068_v8, %v2043_v62  ;;  %v1947_v0 = vpop.f32.mrf.mxu1  ;;  %v4130_v52 = vperm.slane %v2147_v2, %v3118_v14 }
 0x424   :  { %v2075_v48 = vperm.slane %v2069_v32, %v3122_v26  ;;  %v2080_v34 = vrot.slane %v2063_v30, 4  ;;  %v2083_v20 = vsel %vm278_vm1, 0.0, %v2082_v27  ;;  %v2086_v22 = vrot.slane %v2079_v10, 4 }
 0x425   :  { %v2256_v36 = vsel %vm278_vm1, %v2082_v27, %v2063_v30  ;;  %v2261_v5 = vrot.slane %v2083_v20, 4  ;;  %v2100_v53 = vrot.slane %v1947_v0, 4  ;;  %v2170_v25 = vrot.slane %v4120_v17, 4 }
 0x426   :  { %v2081_v57 = vsel %vm278_vm1, 0.0, %v2080_v34  ;;  %v2084_v1 = vrot.slane %v2075_v48, 4  ;;  %v2087_v42 = vsel %vm278_vm1, 0.0, %v2086_v22  ;;  %v2260_v12 = vperm.slane %v2256_v36, %v3118_v14  ;;  %v1982_v58 = vpop.f32.mrf.mxu2 }
 0x427   :  { %v2262_v47 = vsel %vm278_vm1, %v2261_v5, %v2081_v57  ;;  %v2267_v33 = vsel %vm278_vm1, %v2086_v22, %v2075_v48  ;;  %v2272_v56 = vrot.slane %v2087_v42, 4  ;;  %v2202_v11 = vrot.slane %v1982_v58, 4  ;;  %v2023_v29 = vpop.f32.mrf.mxu3 }
 0x428   :  { %v2266_v43 = vperm.slane %v2262_v47, %v3118_v14  ;;  %v2280_v45 = vrot.slane %v2260_v12, 4  ;;  %v2085_v59 = vsel %vm278_vm1, 0.0, %v2084_v1  ;;  %v2200_v15 = vrot.slane %v2023_v29, 4 }
 0x429   :  { %v4133_v60 = vperm.slane %v2267_v33, %v3118_v14  ;;  %v2273_v38 = vsel %vm278_vm1, %v2272_v56, %v2085_v59  ;;  %v2203_v6 = vsel %vm278_vm1, %v2023_v29, %v2202_v11  ;;  %v1906_v7 = vpop.f32.mrf.mxu0  ;;  %v2182_v31 = vrot.slane %v4130_v52, 4 }
 0x42a   :  { %v4138_v21 = vperm.slane %v2273_v38, %v3118_v14  ;;  %v2281_v23 = vsel %vm278_vm1, %v2266_v43, %v2280_v45  ;;  %v2278_v62 = vrot.slane %v2266_v43, 4  ;;  %v2201_v41 = vsel %vm278_vm1, %v2200_v15, %v1982_v58 }
 0x42b   :  { %v4143_v54 = vperm.slane %v2203_v6, %v3118_v14  ;;  %v2101_v37 = vsel %vm278_vm1, %v2100_v53, %v1906_v7  ;;  %v2102_v4 = vrot.slane %v1906_v7, 4  ;;  %v4148_v18 = vperm.slane %v2201_v41, %v3118_v14 }
 0x42c   :  { %v2107_v24 = vperm.slane %v2101_v37, %v3118_v14  ;;  %v2292_v39 = vrot.slane %v4133_v60, 4  ;;  %v4156_v40 = vperm.slane %v2281_v23, %v3122_v26  ;;  %v2279_v35 = vsel %vm278_vm1, %v2278_v62, %v2260_v12 }
 0x42d   :  { %v2103_v50 = vsel %vm278_vm1, %v1947_v0, %v2102_v4  ;;  %v2238_v3 = vrot.slane %v4143_v54, 4  ;;  %v2290_v8 = vrot.slane %v4138_v21, 4  ;;  %v2226_v19 = vrot.slane %v4148_v18, 4 }
 0x42e   :  { %v2111_v28 = vperm.slane %v2103_v50, %v3118_v14  ;;  %v2112_v63 = vrot.slane %v2107_v24, 4  ;;  %v2115_v9 = vsel %vm278_vm1, %v2107_v24, %v2114_v46  ;;  %v2293_v55 = vsel %vm278_vm1, %v4138_v21, %v2292_v39 }
 0x42f   :  { %v2123_v49 = vperm.slane %v2115_v9, %v3122_v26  ;;  %v2026_v27 = vpop.f32.mrf.mxu3  ;;  %v2308_v34 = vrot.slane %v4156_v40, 4  ;;  %v4176_v36 = vperm.slane %v2293_v55, %v3122_v26  ;;  %v4186_v53 = vperm.slane %v2279_v35, %v3122_v26 }
 0x430   :  { %v2113_v44 = vsel %vm278_vm1, %v2112_v63, %v4099_v61  ;;  %v2124_v30 = vrot.slane %v2111_v28, 4  ;;  %v2127_v10 = vsel %vm278_vm1, %v2111_v28, %v2126_v51  ;;  %v2156_v22 = vrot.slane %v2026_v27, 4 }
 0x431   :  { %v2119_v13 = vperm.slane %v2113_v44, %v3122_v26  ;;  %v2135_v46 = vperm.slane %v2127_v10, %v3122_v26  ;;  %v2138_v32 = vrot.slane %v2123_v49, 4  ;;  %v1985_v48 = vpop.f32.mrf.mxu2  ;;  %v4192_v11 = vsel %vm278_vm1, %v4176_v36, %v2308_v34 }
 0x432   :  { %v2125_v20 = vsel %vm278_vm1, %v2124_v30, %v4111_v16  ;;  %v2158_v0 = vrot.slane %v1985_v48, 4  ;;  %v2157_v12 = vsel %vm278_vm1, %v2156_v22, %v1985_v48  ;;  %v2306_v38 = vrot.slane %v4176_v36, 4 }
 0x433   :  { %v2131_v61 = vperm.slane %v2125_v20, %v3122_v26  ;;  %v2136_v5 = vrot.slane %v2119_v13, 4  ;;  %v2139_v2 = vsel %vm278_vm1, 0.0, %v2138_v32  ;;  %v2142_v57 = vrot.slane %v2135_v46, 4 }
 0x434   :  { %v2310_v1 = vsel %vm278_vm1, %v2138_v32, %v2119_v13  ;;  %v2315_v42 = vrot.slane %v2139_v2, 4  ;;  %v2159_v47 = vsel %vm278_vm1, %v2026_v27, %v2158_v0  ;;  %v2163_v45 = vperm.slane %v2157_v12, %v3118_v14 }
 0x435   :  { %v2137_v16 = vsel %vm278_vm1, 0.0, %v2136_v5  ;;  %v2140_v33 = vrot.slane %v2131_v61, 4  ;;  %v2143_v56 = vsel %vm278_vm1, 0.0, %v2142_v57  ;;  %v4195_v29 = vperm.slane %v2310_v1, %v3118_v14 }
 0x436   :  { %v2316_v58 = vsel %vm278_vm1, %v2315_v42, %v2137_v16  ;;  %v2326_v43 = vrot.slane %v2143_v56, 4  ;;  %v2167_v59 = vperm.slane %v2159_v47, %v3118_v14  ;;  %v2321_v7 = vsel %vm278_vm1, %v2142_v57, %v2131_v61 }
 0x437   :  { %v2141_v15 = vsel %vm278_vm1, 0.0, %v2140_v33  ;;  %v4201_v6 = vperm.slane %v2316_v58, %v3118_v14  ;;  %v2168_v23 = vrot.slane %v2163_v45, 4  ;;  %v2171_v62 = vsel %vm278_vm1, %v2163_v45, %v2170_v25  ;;  %v2029_v41 = vpop.f32.mrf.mxu3 }
 0x438   :  { %v2179_v37 = vperm.slane %v2171_v62, %v3122_v26  ;;  %v2180_v4 = vrot.slane %v2167_v59, 4  ;;  %v2183_v51 = vsel %vm278_vm1, %v2167_v59, %v2182_v31  ;;  %v2212_v24 = vrot.slane %v2029_v41, 4 }
 0x439   :  { %v1988_v39 = vpop.f32.mrf.mxu2  ;;  %v2169_v50 = vsel %vm278_vm1, %v2168_v23, %v4120_v17  ;;  %v2191_v28 = vperm.slane %v2183_v51, %v3122_v26  ;;  %v2327_v9 = vsel %vm278_vm1, %v2326_v43, %v2141_v15  ;;  %v2334_v32 = vrot.slane %v4195_v29, 4 }
 0x43a   :  { %v2214_v63 = vrot.slane %v1988_v39, 4  ;;  %v2175_v49 = vperm.slane %v2169_v50, %v3122_v26  ;;  %v2181_v25 = vsel %vm278_vm1, %v2180_v4, %v4130_v52  ;;  %v2194_v55 = vrot.slane %v2179_v37, 4 }
 0x43b   :  { %v2213_v35 = vsel %vm278_vm1, %v2212_v24, %v1988_v39  ;;  %v2187_v31 = vperm.slane %v2181_v25, %v3122_v26  ;;  %v2198_v44 = vrot.slane %v2191_v28, 4  ;;  %v2325_v48 = vperm.slane %v2321_v7, %v3118_v14 }
 0x43c   :  { %v2215_v30 = vsel %vm278_vm1, %v2029_v41, %v2214_v63  ;;  %v2219_v17 = vperm.slane %v2213_v35, %v3118_v14  ;;  %v2192_v10 = vrot.slane %v2175_v49, 4  ;;  %v2195_v27 = vsel %vm278_vm1, 0.0, %v2194_v55 }
 0x43d   :  { %v2364_v13 = vsel %vm278_vm1, %v2194_v55, %v2175_v49  ;;  %v2223_v46 = vperm.slane %v2215_v30, %v3118_v14  ;;  %v2199_v52 = vsel %vm278_vm1, 0.0, %v2198_v44  ;;  %v2331_v34 = vperm.slane %v2327_v9, %v3118_v14 }
 0x43e   :  { %v2196_v20 = vrot.slane %v2187_v31, 4  ;;  %v4226_v22 = vperm.slane %v2364_v13, %v3118_v14  ;;  %v2369_v0 = vrot.slane %v2195_v27, 4  ;;  %v2224_v61 = vrot.slane %v2219_v17, 4 }
 0x43f   :  { %v2193_v5 = vsel %vm278_vm1, 0.0, %v2192_v10  ;;  %v2375_v2 = vsel %vm278_vm1, %v2198_v44, %v2187_v31  ;;  %v2380_v57 = vrot.slane %v2199_v52, 4  ;;  %v2227_v1 = vsel %vm278_vm1, %v2219_v17, %v2226_v19 }
 0x440   :  { %v2225_v42 = vsel %vm278_vm1, %v2224_v61, %v4148_v18  ;;  %v2235_v12 = vperm.slane %v2227_v1, %v3122_v26  ;;  %v2236_v47 = vrot.slane %v2223_v46, 4  ;;  %v2239_v16 = vsel %vm278_vm1, %v2223_v46, %v2238_v3 }
 0x441   :  { %v2231_v33 = vperm.slane %v2225_v42, %v3122_v26  ;;  %v2247_v56 = vperm.slane %v2239_v16, %v3122_v26  ;;  %v2335_v58 = vsel %vm278_vm1, %v4201_v6, %v2334_v32  ;;  %v2346_v43 = vrot.slane %v2325_v48, 4 }
 0x442   :  { %v2197_v19 = vsel %vm278_vm1, 0.0, %v2196_v20  ;;  %v2237_v18 = vsel %vm278_vm1, %v2236_v47, %v4143_v54  ;;  %v2250_v45 = vrot.slane %v2235_v12, 4  ;;  %v2343_v59 = vperm.slane %v2335_v58, %v3122_v26 }
 0x443   :  { %v2243_v15 = vperm.slane %v2237_v18, %v3122_v26  ;;  %v2248_v7 = vrot.slane %v2231_v33, 4  ;;  %v2254_v3 = vrot.slane %v2247_v56, 4  ;;  %v2347_v23 = vsel %vm278_vm1, %v2331_v34, %v2346_v43 }
 0x444   :  { %v2251_v62 = vsel %vm278_vm1, 0.0, %v2250_v45  ;;  %v2418_v41 = vsel %vm278_vm1, %v2250_v45, %v2231_v33  ;;  %v2355_v37 = vperm.slane %v2347_v23, %v3122_v26  ;;  %v2362_v4 = vrot.slane %v2343_v59, 4 }
 0x445   :  { %v2370_v51 = vsel %vm278_vm1, %v2369_v0, %v2193_v5  ;;  %v2379_v54 = vperm.slane %v2375_v2, %v3118_v14  ;;  %v2252_v24 = vrot.slane %v2243_v15, 4  ;;  %v2255_v39 = vsel %vm278_vm1, 0.0, %v2254_v3 }
 0x446   :  { %v2249_v50 = vsel %vm278_vm1, 0.0, %v2248_v7  ;;  %v2423_v28 = vrot.slane %v2251_v62, 4  ;;  %v2363_v63 = vsel %vm278_vm1, %v2355_v37, %v2362_v4  ;;  %v2307_v9 = vsel %vm278_vm1, %v2306_v38, %v4156_v40 }
 0x447   :  { %v2422_v49 = vperm.slane %v2418_v41, %v3118_v14  ;;  %v2429_v25 = vsel %vm278_vm1, %v2254_v3, %v2243_v15  ;;  %v2811_v55 = vpack.i.bf16 %v2363_v63, %v4192_v11  ;;  %v2360_v35 = vrot.slane %v2355_v37, 4 }
 0x448   :  { %v2253_v31 = vsel %vm278_vm1, 0.0, %v2252_v24  ;;  %v2434_v44 = vrot.slane %v2255_v39, 4  ;;  %v2291_v30 = vsel %vm278_vm1, %v2290_v8, %v4133_v60  ;;  %v2332_v17 = vrot.slane %v4201_v6, 4 }
 0x449   :  { %v2424_v36 = vsel %vm278_vm1, %v2423_v28, %v2249_v50  ;;  %2812 = vrot.lane.b32.xlu1 %v2811_v55, %s3039_s14  ;;  %v2361_v40 = vsel %vm278_vm1, %v2360_v35, %v2343_v59  ;;  %v2297_v11 = vperm.slane %v2291_v30, %v3122_v26  ;;  %v2344_v38 = vrot.slane %v2331_v34, 4 }
 0x44a   :  { %v2806_v10 = vpack.i.bf16 %v2361_v40, %v2307_v9  ;;  %v2304_v27 = vrot.slane %v4186_v53, 4  ;;  %v2333_v21 = vsel %vm278_vm1, %v2332_v17, %v4195_v29  ;;  %v2381_v60 = vsel %vm278_vm1, %v2380_v57, %v2197_v19 }
 0x44b   :  { %v2433_v8 = vperm.slane %v2429_v25, %v3118_v14  ;;  %v2339_v6 = vperm.slane %v2333_v21, %v3122_v26  ;;  %v2345_v13 = vsel %vm278_vm1, %v2344_v38, %v2325_v48  ;;  %v2374_v46 = vperm.slane %v2370_v51, %v3118_v14  ;;  %v2705_v21 = vld [vmem:[#allocation8 + $0x8] sm:$0xff] }
 0x44c   :  { %2807 = vrot.lane.b32.xlu2 %v2806_v10, %s3040_s15  ;;  %v2351_v32 = vperm.slane %v2345_v13, %v3122_v26  ;;  %v2385_v52 = vperm.slane %v2381_v60, %v3118_v14  ;;  %v2388_v34 = vrot.slane %v4226_v22, 4  ;;  %v2400_v29 = vrot.slane %v2379_v54, 4  ;;  %v2707_v10 = vld [vmem:[#allocation8 + $0x18] sm:$0xff]  ;;  %v2704_v60 = vld [vmem:[#allocation8] sm:$0xff] }
 0x44d   :  { %v2302_v20 = vrot.slane %v2297_v11, 4  ;;  %v2358_v0 = vrot.slane %v2339_v6, 4  ;;  %v2428_v61 = vperm.slane %v2424_v36, %v3118_v14  ;;  %v2435_v5 = vsel %vm278_vm1, %v2434_v44, %v2253_v31  ;;  %2578 = vmatpush.bf16.msra.mxu0 %v2707_v10 }
 0x44e   :  { %v2305_v48 = vsel %vm278_vm1, %v2297_v11, %v2304_v27  ;;  %v2401_v2 = vsel %vm278_vm1, %v2385_v52, %v2400_v29  ;;  %v2439_v57 = vperm.slane %v2435_v5, %v3118_v14  ;;  %v2442_v1 = vrot.slane %v2422_v49, 4  ;;  %v2706_v27 = vld [vmem:[#allocation8 + $0x10] sm:$0xff] }
 0x44f   :  { %v2359_v42 = vsel %vm278_vm1, %v2351_v32, %v2358_v0  ;;  %v2409_v12 = vperm.slane %v2401_v2, %v3122_v26  ;;  %v2454_v47 = vrot.slane %v2433_v8, 4  ;;  %v2386_v16 = vrot.slane %v2374_v46, 4 }
 0x450   :  { %v2801_v33 = vpack.i.bf16 %v2359_v42, %v2305_v48  ;;  %v2389_v56 = vsel %vm278_vm1, %v2374_v46, %v2388_v34  ;;  %v2398_v58 = vrot.slane %v2385_v52, 4  ;;  %v2440_v43 = vrot.slane %v2428_v61, 4 }
 0x451   :  { %v2414_v19 = vrot.slane %v2409_v12, 4  ;;  %v2443_v18 = vsel %vm278_vm1, %v2428_v61, %v2442_v1  ;;  %v2455_v45 = vsel %vm278_vm1, %v2439_v57, %v2454_v47  ;;  %v2387_v14 = vsel %vm278_vm1, %v2386_v16, %v4226_v22  ;;  %2579 = vmatpush.bf16.msra.mxu0 %v2706_v27 }
 0x452   :  { %2802 = vrot.lane.b32.xlu0 %v2801_v33, %s3025_s24  ;;  %v2463_v59 = vperm.slane %v2455_v45, %v3122_v26  ;;  %v2393_v15 = vperm.slane %v2387_v14, %v3122_v26  ;;  %v2399_v7 = vsel %vm278_vm1, %v2398_v58, %v2379_v54  ;;  %v2441_v3 = vsel %vm278_vm1, %v2440_v43, %v2422_v49 }
 0x453   :  { %v2356_v23 = vrot.slane %v2351_v32, 4  ;;  %v2405_v62 = vperm.slane %v2399_v7, %v3122_v26  ;;  %v2447_v41 = vperm.slane %v2441_v3, %v3122_v26  ;;  %v2452_v37 = vrot.slane %v2439_v57, 4 }
 0x454   :  { %v2397_v4 = vperm.slane %v2389_v56, %v3122_v26  ;;  %v2451_v22 = vperm.slane %v2443_v18, %v3122_v26  ;;  %v2468_v51 = vrot.slane %v2463_v59, 4  ;;  %v2412_v24 = vrot.slane %v2393_v15, 4 }
 0x455   :  { %v2410_v39 = vrot.slane %v2405_v62, 4  ;;  %v2453_v50 = vsel %vm278_vm1, %v2452_v37, %v2433_v8  ;;  %v2466_v28 = vrot.slane %v2447_v41, 4  ;;  %v2303_v54 = vsel %vm278_vm1, %v2302_v20, %v4186_v53  ;;  %2580 = vmatpush.bf16.msra.mxu0 %v2705_v21 }
 0x456   :  { %v2415_v63 = vsel %vm278_vm1, %v2414_v19, %v2397_v4  ;;  %v2469_v9 = vsel %vm278_vm1, %v2468_v51, %v2451_v22  ;;  %v2459_v49 = vperm.slane %v2453_v50, %v3122_v26  ;;  %v2357_v55 = vsel %vm278_vm1, %v2356_v23, %v2339_v6 }
 0x457   :  { %v2821_v25 = vpack.i.bf16 %v2469_v9, %v2415_v63  ;;  %v2411_v35 = vsel %vm278_vm1, %v2410_v39, %v2393_v15  ;;  %v2413_v31 = vsel %vm278_vm1, %v2405_v62, %v2412_v24  ;;  %v2470_v53 = vrot.slane %v2451_v22, 4 }
 0x458   :  { %v2464_v44 = vrot.slane %v2459_v49, 4  ;;  %v2467_v30 = vsel %vm278_vm1, %v2459_v49, %v2466_v28  ;;  %v2416_v40 = vrot.slane %v2397_v4, 4 }
 0x459   :  { %2822 = vrot.lane.b32.xlu2 %v2821_v25, %s3040_s15  ;;  %v2816_v17 = vpack.i.bf16 %v2467_v30, %v2413_v31  ;;  %v2471_v26 = vsel %vm278_vm1, %v2463_v59, %v2470_v53  ;;  %2581 = vmatpush.bf16.msra.mxu0 %v2704_v60 }
 0x45a   :  { %v2465_v36 = vsel %vm278_vm1, %v2464_v44, %v2447_v41  ;;  %v2417_v11 = vsel %vm278_vm1, %v2409_v12, %v2416_v40 }
 0x45b   :  { %2817 = vrot.lane.b32.xlu0 %v2816_v17, %s3025_s24  ;;  %v2826_v38 = vpack.i.bf16 %v2471_v26, %v2417_v11 }
 0x463   :  { %2827 = vrot.lane.b32.xlu0 %v2826_v38, %s3039_s14 }
 0x4a6   :  { %v2808_v8 = vpop.permute.xlu2 %2807 }
 0x4a7   :  { %v2810_v52 = vunpack.i.h.bf16 %v2808_v8  ;;  %v2809_v34 = vunpack.i.l.bf16 %v2808_v8 }
 0x4b3   :  { %v2823_v16 = vpop.permute.xlu2 %2822 }
 0x4b4   :  { %v2825_v58 = vunpack.i.h.bf16 %v2823_v16  ;;  %v2824_v43 = vunpack.i.l.bf16 %v2823_v16 }
 0x4bb   :  { %v2813_v6 = vpop.permute.xlu1 %2812 }
 0x4bc   :  { %v2815_v29 = vunpack.i.h.bf16 %v2813_v6  ;;  %v2814_v20 = vunpack.i.l.bf16 %v2813_v6 }
 0x4c4   :  { %v2803_v13 = vpop.permute.xlu0 %2802 }
 0x4c5   :  { %v2805_v46 = vunpack.i.h.bf16 %v2803_v13  ;;  %v2804_v32 = vunpack.i.l.bf16 %v2803_v13 }
 0x4c7   :  { %v2521_v0 = vsel %vm1534_vm2, %v2357_v55, %v2805_v46  ;;  %v2520_v61 = vsel %vm1534_vm2, %v2303_v54, %v2804_v32 }
 0x4c8   :  { %v2526_v5 = vsel %vm2524_vm5, %v2521_v0, %v2810_v52  ;;  %v2525_v48 = vsel %vm2524_vm5, %v2520_v61, %v2809_v34 }
 0x4c9   :  { %v2531_v2 = vsel %vm2529_vm6, %v2526_v5, %v2815_v29  ;;  %v2530_v57 = vsel %vm2529_vm6, %v2525_v48, %v2814_v20 }
 0x4ca   :  { %v2534_v1 = vpack.c.bf16 %v2531_v2, %v2530_v57 }
 0x4cc   :  { %2694 = vmatmul.msk.bf16.vlgmr.msra.gmra.mxu0 %vm136_vm0, %v2534_v1 }
 0x4cd   :  { %v2818_v42 = vpop.permute.xlu0 %2817 }
 0x4ce   :  { %v2820_v12 = vunpack.i.h.bf16 %v2818_v42  ;;  %v2819_v47 = vunpack.i.l.bf16 %v2818_v42 }
 0x4d0   :  { %v2522_v33 = vsel %vm1534_vm2, %v2411_v35, %v2819_v47  ;;  %v2523_v56 = vsel %vm1534_vm2, %v2465_v36, %v2820_v12 }
 0x4d1   :  { %v2527_v14 = vsel %vm2524_vm5, %v2522_v33, %v2824_v43  ;;  %v2528_v59 = vsel %vm2524_vm5, %v2523_v56, %v2825_v58 }
 0x4d5   :  { %v2828_v19 = vpop.permute.xlu0 %2827 }
 0x4d6   :  { %v2830_v18 = vunpack.i.h.bf16 %v2828_v19  ;;  %v2829_v45 = vunpack.i.l.bf16 %v2828_v19 }
 0x4d8   :  { %v2532_v15 = vsel %vm2529_vm6, %v2527_v14, %v2829_v45  ;;  %v2533_v7 = vsel %vm2529_vm6, %v2528_v59, %v2830_v18 }
 0x4d9   :  { %v2535_v3 = vpack.c.bf16 %v2533_v7, %v2532_v15 }
 0x4dc   :  { %2695 = vmatmul.msk.bf16.gmra.mxu0 %vm136_vm0, %v2535_v3 }
 0x549   :  { %v2583_v23 = vpop.f32.mrf.mxu0 }
 0x54a   :  { %2593 = vst.msk [vmem:[#allocation10] sm:$0xff] %vm136_vm0, %v2583_v23 }
 0x551   :  { %v2585_v62 = vpop.f32.mrf.mxu0 }
 0x552   :  { %2594 = vst.msk [vmem:[#allocation10 + $0x8] sm:$0xff] %vm136_vm0, %v2585_v62 }
 0x559   :  { %v2588_v41 = vpop.f32.mrf.mxu0 }
 0x55a   :  { %2595 = vst.msk [vmem:[#allocation10 + $0x10] sm:$0xff] %vm136_vm0, %v2588_v41 }
 0x561   :  { %v2590_v37 = vpop.f32.mrf.mxu0 }
 0x562   :  { %2596 = vst.msk [vmem:[#allocation10 + $0x18] sm:$0xff] %vm136_vm0, %v2590_v37 }
 0x563   :  { %2609 = dma.vmem_to_hbm [thread:$0]  %s2602_s17, 512, %s2604_s20, [#allocation4], %s3027_s27, %s3027_s27, %s3028_s28  }
 0x564   :  { %3021 = dma.done.wait [#allocation4], 512  }
 0x565   :  { %3022 = vsyncadd [#allocation4], 4294966784 }
 0x566   :  { %2614 = vsyncpa [#allocation3], 1 }
 0x567   :  { %2615 = vsyncpa [#allocation6], 1 }
 0x568   :  { %2616 = vsyncpa [#allocation9], 1 }
 0x569   :  { %2617 = vsyncpa [#allocation4], 1 }

</bundles_post_ra>
